<compile_context>
chip_gen: v7x
topology: tpu7x:2x2x1
jax: 0.10.0
libtpu: 0.0.40
codegen_flags: <defaults>
</compile_context>

<pallas_src>
import jax
import jax.numpy as jnp
from jax.experimental import pallas as pl
from jax.experimental.pallas import tpu as pltpu

H = 64          # LSTM hidden size
SEQ = 4         # sequence length (8 inputs / 2 features)
IN = 2          # LSTM input size
N_EXTRA = 5     # x2..x6
FC1, FC2, FC3 = 30, 10, 1

MAX_TILE = 1024  # max batch rows per grid step (sweepable); multiple of 128


def _round_up(n, m):
    return ((n + m - 1) // m) * m


def _lstm_gates(gates, c):
    """gates: (TB, 4H) pre-activations in repacked (i, f, o, g) order; c: (TB, H) or None (zeros)."""
    # sigmoid via tanh: one EUP op per element instead of exp + reciprocal.
    sig = 0.5 * jnp.tanh(0.5 * gates[:, :3 * H]) + 0.5
    i_g = sig[:, 0 * H:1 * H]
    f_g = sig[:, 1 * H:2 * H]
    o_g = sig[:, 2 * H:3 * H]
    g_g = jnp.tanh(gates[:, 3 * H:])
    c_new = i_g * g_g if c is None else f_g * c + i_g * g_g
    h_new = o_g * jnp.tanh(c_new)
    return h_new, c_new


def value_net_kernel(x_ref,
                     w_ih0_ref, b0_ref,
                     w_big_ref, b1_ref,
                     w1h_ref, w1e_ref, bfc1_ref,
                     w2_ref, bfc2_ref,
                     w3_ref, bfc3_ref,
                     out_ref):
    f32 = jnp.float32
    bf16 = jnp.bfloat16
    TB = x_ref.shape[0]

    x = x_ref[...]                 # (TB, 16) f32: cols 0..7 = sequence, 8..12 = extras, 13..15 pad
    w_ih0 = w_ih0_ref[...]         # (2, 4H)  f32  (VPU)
    b0 = b0_ref[...]               # (1, 4H)  f32
    w_big = w_big_ref[...]         # (2H, 8H) bf16 (MXU)
    b1 = b1_ref[...]               # (1, 4H)  f32

    def in_proj(t):
        # layer-0 input projection for timestep t: K=2 -> pure VPU broadcast-FMA
        return (x[:, 2 * t:2 * t + 1] * w_ih0[0:1, :]
                + x[:, 2 * t + 1:2 * t + 2] * w_ih0[1:2, :] + b0)        # (TB, 4H)

    # fc1's x-extra contribution (K=5) as VPU broadcast-FMAs; depends only on the input block so
    # the scheduler can hide it entirely under the serial LSTM chain.
    w1e = w1e_ref[...]             # (5, 30) f32
    pre1 = bfc1_ref[...]
    for j in range(N_EXTRA):
        pre1 = pre1 + x[:, 8 + j:9 + j] * w1e[j:j + 1, :]                # (TB, 30)

    # ---- 2-layer LSTM, SEQ=4, fully unrolled; t=0 peeled (states start at zero) ----
    # Each step: one fused bf16 matmul [h0(t), h1(t-1)] @ W_big ->
    #   columns [:4H]  = layer-0 recurrent term for step t+1 (h0(t) @ w_hh0)
    #   columns [4H:]  = layer-1 gate pre-activations of step t (pre-bias)
    h0, c0 = _lstm_gates(in_proj(0), None)
    h1 = jnp.zeros((TB, H), f32)
    c1 = None
    for t in range(SEQ):
        last = t == SEQ - 1
        if t == 0:
            lhs = h0.astype(bf16)                            # h1(-1)==0: skip concat + bottom half
            rhs = w_big[:H, :]
        else:
            lhs = jnp.concatenate([h0, h1], axis=1).astype(bf16)
            rhs = w_big[:, 4 * H:] if last else w_big        # last step: only the g1 half needed
        big = jnp.dot(lhs, rhs, preferred_element_type=f32)
        g1 = (big if last else big[:, 4 * H:]) + b1
        h1_new, c1 = _lstm_gates(g1, c1)
        if not last:
            g0 = in_proj(t + 1) + big[:, :4 * H]
            h0, c0 = _lstm_gates(g0, c0)
        h1 = h1_new

    # ---- MLP head (bf16 MXU operands, f32 accumulation) ----
    pre1 = pre1 + jnp.dot(h1.astype(bf16), w1h_ref[...], preferred_element_type=f32)
    out1 = jnp.maximum(pre1, 0.0)                                        # (TB, 30)
    pre2 = jnp.dot(out1.astype(bf16), w2_ref[...], preferred_element_type=f32) + bfc2_ref[...]
    out2 = jnp.maximum(pre2, 0.0)                                        # (TB, 10)
    # fc3 directly in lane-dense (batch-on-lanes) form: w3's row is replicated 8x offline so a
    # single A @ B^T matmul emits the whole (8, TB) output block (dense stores + dense writeback).
    res = jnp.einsum("ok,bk->ob", w3_ref[...], out2.astype(bf16),
                     preferred_element_type=f32)                         # (8, TB)
    out_ref[...] = res + bfc3_ref[...]


@jax.jit
def value_network_forward(x, params):
    """x: (13,) or (B, 13) float32 -> (1, 1) or (B, 1) float32."""
    x = jnp.asarray(x, jnp.float32)
    if x.ndim == 1:
        x = x[None, :]
    B = x.shape[0]

    # Batch-tile policy:
    #   * small B: a single tile of round_up(B, 8) rows (one grid step).
    #   * large B: tiles that are multiples of 128 lanes (lane-dense output blocks), capped at
    #     MAX_TILE, sized so the grid has >= 2 steps (v7x megacore; no-op on v5e/v6e).
    B8 = _round_up(B, 8)
    if B8 <= 256:
        TB = B8
    else:
        TB = min(MAX_TILE, _round_up((B + 1) // 2, 128))
    Bp = _round_up(B, TB)

    # One contiguous (Bp, 16) input slab: cols 0..7 = LSTM sequence, 8..12 = extras, 13..15 pad.
    x_p = jnp.pad(x, ((0, Bp - B), (0, 16 - 13)))

    weights = (params["w_ih0_T"], params["b0"],
               params["w_big"], params["b1"],
               params["w1h_T"], params["w1e_T"], params["bfc1"],
               params["w2_T"], params["bfc2"],
               params["w3_rep"], params["bfc3"])

    in_specs = ([pl.BlockSpec((TB, 16), lambda i: (i, 0))]
                + [pl.BlockSpec(w.shape, lambda i: (0, 0)) for w in weights])

    out2d = pl.pallas_call(
        value_net_kernel,
        out_shape=jax.ShapeDtypeStruct((8, Bp), jnp.float32),   # lane-dense: batch on lanes
        grid=(Bp // TB,),
        in_specs=in_specs,
        out_specs=pl.BlockSpec((8, TB), lambda i: (0, i)),
        compiler_params=pltpu.CompilerParams(
            dimension_semantics=("parallel",),
            vmem_limit_bytes=32 * 1024 * 1024),
    )(x_p, *weights)

    return out2d[0, :B][:, None]


def _reorder_ifog(w):
    """PyTorch LSTM gate blocks are (i, f, g, o) along axis 0; repack to (i, f, o, g)."""
    i, f, g, o = jnp.split(w, 4, axis=0)
    return jnp.concatenate([i, f, o, g], axis=0)


def init_params(key):
    """Deterministic init with PyTorch-default ranges (U(-1/sqrt(fan), 1/sqrt(fan)))."""
    keys = iter(jax.random.split(key, 32))

    def u(k, shape, bound):
        return jax.random.uniform(k, shape, jnp.float32, -bound, bound)

    kl = 1.0 / jnp.sqrt(jnp.float32(H))
    # LSTM layer 0
    w_ih0 = u(next(keys), (4 * H, IN), kl)
    w_hh0 = u(next(keys), (4 * H, H), kl)
    b_ih0 = u(next(keys), (4 * H,), kl)
    b_hh0 = u(next(keys), (4 * H,), kl)
    # LSTM layer 1
    w_ih1 = u(next(keys), (4 * H, H), kl)
    w_hh1 = u(next(keys), (4 * H, H), kl)
    b_ih1 = u(next(keys), (4 * H,), kl)
    b_hh1 = u(next(keys), (4 * H,), kl)
    # Linear layers
    k1 = 1.0 / jnp.sqrt(jnp.float32(H + N_EXTRA))
    w1 = u(next(keys), (FC1, H + N_EXTRA), k1)
    bf1 = u(next(keys), (FC1,), k1)
    k2 = 1.0 / jnp.sqrt(jnp.float32(FC1))
    w2 = u(next(keys), (FC2, FC1), k2)
    bf2 = u(next(keys), (FC2,), k2)
    k3 = 1.0 / jnp.sqrt(jnp.float32(FC2))
    w3 = u(next(keys), (FC3, FC2), k3)
    bf3 = u(next(keys), (FC3,), k3)

    bf16 = jnp.bfloat16
    # Fused recurrent weight (gate order repacked to (i,f,o,g), transposed to (in, out)):
    #   [h0, h1] @ W_big = [ h0 @ w_hh0^T  |  h0 @ w_ih1^T + h1 @ w_hh1^T ]
    w_big = jnp.zeros((2 * H, 8 * H), jnp.float32)
    w_big = w_big.at[:H, :4 * H].set(_reorder_ifog(w_hh0).T)
    w_big = w_big.at[:H, 4 * H:].set(_reorder_ifog(w_ih1).T)
    w_big = w_big.at[H:, 4 * H:].set(_reorder_ifog(w_hh1).T)

    return {
        "w_ih0_T": _reorder_ifog(w_ih0).T,                       # (2, 4H)  f32 (VPU FMA)
        "b0": _reorder_ifog(b_ih0 + b_hh0).reshape(1, 4 * H),    # (1, 4H)  f32
        "w_big": w_big.astype(bf16),                             # (2H, 8H) bf16 (fused MXU weight)
        "b1": _reorder_ifog(b_ih1 + b_hh1).reshape(1, 4 * H),    # (1, 4H)  f32
        "w1h_T": w1[:, :H].T.astype(bf16),                       # (H, 30)  bf16
        "w1e_T": w1[:, H:].T,                                    # (5, 30)  f32 (VPU FMA)
        "bfc1": bf1.reshape(1, FC1),
        "w2_T": w2.T.astype(bf16),                               # (30, 10) bf16
        "bfc2": bf2.reshape(1, FC2),
        "w3_rep": jnp.tile(w3.reshape(1, FC2), (8, 1)).astype(bf16),  # (8, 10) bf16, rows replicated
        "bfc3": bf3.reshape(1, 1),
        # raw copies for the pure-JAX reference
        "_raw": (w_ih0, w_hh0, b_ih0, b_hh0, w_ih1, w_hh1, b_ih1, b_hh1,
                 w1, bf1, w2, bf2, w3, bf3),
    }


def reference_forward(x, params):
    """Pure-JAX (batched, f32) re-implementation of the PyTorch forward, for verification."""
    (w_ih0, w_hh0, b_ih0, b_hh0, w_ih1, w_hh1, b_ih1, b_hh1,
     w1, bf1, w2, bf2, w3, bf3) = params["_raw"]
    x = jnp.asarray(x, jnp.float32)
    B = x.shape[0]
    x_seq = x[:, :8].reshape(B, SEQ, IN)
    x_extra = x[:, 8:13]

    def cell(x_t, h, c, w_ih, w_hh, b_ih, b_hh):
        gates = x_t @ w_ih.T + b_ih + h @ w_hh.T + b_hh
        i, f, g, o = jnp.split(gates, 4, axis=-1)
        c_new = jax.nn.sigmoid(f) * c + jax.nn.sigmoid(i) * jnp.tanh(g)
        h_new = jax.nn.sigmoid(o) * jnp.tanh(c_new)
        return h_new, c_new

    h0 = c0 = h1 = c1 = jnp.zeros((B, H), jnp.float32)
    for t in range(SEQ):
        h0, c0 = cell(x_seq[:, t, :], h0, c0, w_ih0, w_hh0, b_ih0, b_hh0)
        h1, c1 = cell(h0, h1, c1, w_ih1, w_hh1, b_ih1, b_hh1)
    datain = jnp.concatenate([h1, x_extra], axis=1)
    out = jax.nn.relu(datain @ w1.T + bf1)
    out = jax.nn.relu(out @ w2.T + bf2)
    return out @ w3.T + bf3


if __name__ == "__main__":
    key = jax.random.PRNGKey(0)
    k_params, k_x1, k_x2, k_x3 = jax.random.split(key, 4)
    params = init_params(k_params)

    # Tolerance is a bit looser than the f32-only version because MXU operands are bf16.
    RTOL = ATOL = 2e-2

    # Single-sample path, matching the PyTorch module's flat 13-element input.
    x_single = jax.random.normal(k_x1, (13,), dtype=jnp.float32)
    out_single = jax.block_until_ready(value_network_forward(x_single, params))
    ref_single = reference_forward(x_single[None, :], params)
    assert out_single.shape == (1, 1)
    assert jnp.all(jnp.isfinite(out_single))
    assert jnp.allclose(out_single, ref_single, rtol=RTOL, atol=ATOL), (out_single, ref_single)

    # Small batch (single tile).
    B = 16
    x_batch = jax.random.normal(k_x2, (B, 13), dtype=jnp.float32)
    out_batch = jax.block_until_ready(value_network_forward(x_batch, params))
    ref_batch = reference_forward(x_batch, params)
    assert out_batch.shape == (B, 1)
    assert jnp.all(jnp.isfinite(out_batch))
    assert jnp.allclose(out_batch, ref_batch, rtol=RTOL, atol=ATOL)

    # Larger batch: exercises the multi-tile grid (>= 2 parallel steps -> megacore on v7x).
    B = 300
    x_big = jax.random.normal(k_x3, (B, 13), dtype=jnp.float32)
    out_big = jax.block_until_ready(value_network_forward(x_big, params))
    ref_big = reference_forward(x_big, params)
    assert out_big.shape == (B, 1)
    assert jnp.all(jnp.isfinite(out_big))
    assert jnp.allclose(out_big, ref_big, rtol=RTOL, atol=ATOL)

    print("KERNEL_OK")
</pallas_src>

<mosaic_0001>
module attributes {stable_mosaic.version = 11 : i64} {
  func.func @value_net_kernel(%arg0: i32, %arg1: memref<8x16xf32, #tpu.memory_space<vmem>>, %arg2: memref<2x256xf32, #tpu.memory_space<vmem>>, %arg3: memref<1x256xf32, #tpu.memory_space<vmem>>, %arg4: memref<128x512xbf16, #tpu.memory_space<vmem>>, %arg5: memref<1x256xf32, #tpu.memory_space<vmem>>, %arg6: memref<64x30xbf16, #tpu.memory_space<vmem>>, %arg7: memref<5x30xf32, #tpu.memory_space<vmem>>, %arg8: memref<1x30xf32, #tpu.memory_space<vmem>>, %arg9: memref<30x10xbf16, #tpu.memory_space<vmem>>, %arg10: memref<1x10xf32, #tpu.memory_space<vmem>>, %arg11: memref<8x10xbf16, #tpu.memory_space<vmem>>, %arg12: memref<1x1xf32, #tpu.memory_space<vmem>>, %arg13: memref<8x8xf32, #tpu.memory_space<vmem>>) attributes {dimension_semantics = [#tpu.dimension_semantics<parallel>], iteration_bounds = array<i64: 1>, scalar_prefetch = 0 : i64, scratch_operands = 0 : i64, tpu.core_type = #tpu.core_type<tc>, window_params = [{transform_indices = @transform_0, window_bounds = array<i64: 8, 16>}, {pipeline_mode = #tpu.pipeline_mode<synchronous>, transform_indices = @transform_1, window_bounds = array<i64: 2, 256>}, {pipeline_mode = #tpu.pipeline_mode<synchronous>, transform_indices = @transform_2, window_bounds = array<i64: 1, 256>}, {pipeline_mode = #tpu.pipeline_mode<synchronous>, transform_indices = @transform_3, window_bounds = array<i64: 128, 512>}, {pipeline_mode = #tpu.pipeline_mode<synchronous>, transform_indices = @transform_4, window_bounds = array<i64: 1, 256>}, {pipeline_mode = #tpu.pipeline_mode<synchronous>, transform_indices = @transform_5, window_bounds = array<i64: 64, 30>}, {pipeline_mode = #tpu.pipeline_mode<synchronous>, transform_indices = @transform_6, window_bounds = array<i64: 5, 30>}, {pipeline_mode = #tpu.pipeline_mode<synchronous>, transform_indices = @transform_7, window_bounds = array<i64: 1, 30>}, {pipeline_mode = #tpu.pipeline_mode<synchronous>, transform_indices = @transform_8, window_bounds = array<i64: 30, 10>}, {pipeline_mode = #tpu.pipeline_mode<synchronous>, transform_indices = @transform_9, window_bounds = array<i64: 1, 10>}, {pipeline_mode = #tpu.pipeline_mode<synchronous>, transform_indices = @transform_10, window_bounds = array<i64: 8, 10>}, {pipeline_mode = #tpu.pipeline_mode<synchronous>, transform_indices = @transform_11, window_bounds = array<i64: 1, 1>}, {transform_indices = @transform_12, window_bounds = array<i64: 8, 8>}]} {
    %c0 = arith.constant 0 : index
    %c0_0 = arith.constant 0 : index
    %0 = vector.load %arg1[%c0, %c0_0] : memref<8x16xf32, #tpu.memory_space<vmem>>, vector<8x16xf32>
    %c0_1 = arith.constant 0 : index
    %c0_2 = arith.constant 0 : index
    %1 = vector.load %arg2[%c0_1, %c0_2] : memref<2x256xf32, #tpu.memory_space<vmem>>, vector<2x256xf32>
    %c0_3 = arith.constant 0 : index
    %c0_4 = arith.constant 0 : index
    %2 = vector.load %arg3[%c0_3, %c0_4] : memref<1x256xf32, #tpu.memory_space<vmem>>, vector<1x256xf32>
    %c0_5 = arith.constant 0 : index
    %c0_6 = arith.constant 0 : index
    %3 = vector.load %arg4[%c0_5, %c0_6] : memref<128x512xbf16, #tpu.memory_space<vmem>>, vector<128x512xbf16>
    %c0_7 = arith.constant 0 : index
    %c0_8 = arith.constant 0 : index
    %4 = vector.load %arg5[%c0_7, %c0_8] : memref<1x256xf32, #tpu.memory_space<vmem>>, vector<1x256xf32>
    %c0_9 = arith.constant 0 : index
    %c0_10 = arith.constant 0 : index
    %5 = vector.load %arg7[%c0_9, %c0_10] : memref<5x30xf32, #tpu.memory_space<vmem>>, vector<5x30xf32>
    %c0_11 = arith.constant 0 : index
    %c0_12 = arith.constant 0 : index
    %6 = vector.load %arg8[%c0_11, %c0_12] : memref<1x30xf32, #tpu.memory_space<vmem>>, vector<1x30xf32>
    %7 = vector.extract_strided_slice %0 {offsets = [0, 8], sizes = [8, 1], strides = [1, 1]} : vector<8x16xf32> to vector<8x1xf32>
    %8 = vector.extract_strided_slice %5 {offsets = [0, 0], sizes = [1, 30], strides = [1, 1]} : vector<5x30xf32> to vector<1x30xf32>
    %9 = vector.broadcast %7 : vector<8x1xf32> to vector<8x30xf32>
    %10 = vector.broadcast %8 : vector<1x30xf32> to vector<8x30xf32>
    %11 = arith.mulf %9, %10 : vector<8x30xf32>
    %12 = vector.broadcast %6 : vector<1x30xf32> to vector<8x30xf32>
    %13 = arith.addf %12, %11 : vector<8x30xf32>
    %14 = vector.extract_strided_slice %0 {offsets = [0, 9], sizes = [8, 1], strides = [1, 1]} : vector<8x16xf32> to vector<8x1xf32>
    %15 = vector.extract_strided_slice %5 {offsets = [1, 0], sizes = [1, 30], strides = [1, 1]} : vector<5x30xf32> to vector<1x30xf32>
    %16 = vector.broadcast %14 : vector<8x1xf32> to vector<8x30xf32>
    %17 = vector.broadcast %15 : vector<1x30xf32> to vector<8x30xf32>
    %18 = arith.mulf %16, %17 : vector<8x30xf32>
    %19 = arith.addf %13, %18 : vector<8x30xf32>
    %20 = vector.extract_strided_slice %0 {offsets = [0, 10], sizes = [8, 1], strides = [1, 1]} : vector<8x16xf32> to vector<8x1xf32>
    %21 = vector.extract_strided_slice %5 {offsets = [2, 0], sizes = [1, 30], strides = [1, 1]} : vector<5x30xf32> to vector<1x30xf32>
    %22 = vector.broadcast %20 : vector<8x1xf32> to vector<8x30xf32>
    %23 = vector.broadcast %21 : vector<1x30xf32> to vector<8x30xf32>
    %24 = arith.mulf %22, %23 : vector<8x30xf32>
    %25 = arith.addf %19, %24 : vector<8x30xf32>
    %26 = vector.extract_strided_slice %0 {offsets = [0, 11], sizes = [8, 1], strides = [1, 1]} : vector<8x16xf32> to vector<8x1xf32>
    %27 = vector.extract_strided_slice %5 {offsets = [3, 0], sizes = [1, 30], strides = [1, 1]} : vector<5x30xf32> to vector<1x30xf32>
    %28 = vector.broadcast %26 : vector<8x1xf32> to vector<8x30xf32>
    %29 = vector.broadcast %27 : vector<1x30xf32> to vector<8x30xf32>
    %30 = arith.mulf %28, %29 : vector<8x30xf32>
    %31 = arith.addf %25, %30 : vector<8x30xf32>
    %32 = vector.extract_strided_slice %0 {offsets = [0, 12], sizes = [8, 1], strides = [1, 1]} : vector<8x16xf32> to vector<8x1xf32>
    %33 = vector.extract_strided_slice %5 {offsets = [4, 0], sizes = [1, 30], strides = [1, 1]} : vector<5x30xf32> to vector<1x30xf32>
    %34 = vector.broadcast %32 : vector<8x1xf32> to vector<8x30xf32>
    %35 = vector.broadcast %33 : vector<1x30xf32> to vector<8x30xf32>
    %36 = arith.mulf %34, %35 : vector<8x30xf32>
    %37 = arith.addf %31, %36 : vector<8x30xf32>
    %38 = vector.extract_strided_slice %0 {offsets = [0, 0], sizes = [8, 1], strides = [1, 1]} : vector<8x16xf32> to vector<8x1xf32>
    %39 = vector.extract_strided_slice %1 {offsets = [0, 0], sizes = [1, 256], strides = [1, 1]} : vector<2x256xf32> to vector<1x256xf32>
    %40 = vector.broadcast %38 : vector<8x1xf32> to vector<8x256xf32>
    %41 = vector.broadcast %39 : vector<1x256xf32> to vector<8x256xf32>
    %42 = arith.mulf %40, %41 : vector<8x256xf32>
    %43 = vector.extract_strided_slice %0 {offsets = [0, 1], sizes = [8, 1], strides = [1, 1]} : vector<8x16xf32> to vector<8x1xf32>
    %44 = vector.extract_strided_slice %1 {offsets = [1, 0], sizes = [1, 256], strides = [1, 1]} : vector<2x256xf32> to vector<1x256xf32>
    %45 = vector.broadcast %43 : vector<8x1xf32> to vector<8x256xf32>
    %46 = vector.broadcast %44 : vector<1x256xf32> to vector<8x256xf32>
    %47 = arith.mulf %45, %46 : vector<8x256xf32>
    %48 = arith.addf %42, %47 : vector<8x256xf32>
    %49 = vector.broadcast %2 : vector<1x256xf32> to vector<8x256xf32>
    %50 = arith.addf %48, %49 : vector<8x256xf32>
    %51 = vector.extract_strided_slice %50 {offsets = [0, 0], sizes = [8, 192], strides = [1, 1]} : vector<8x256xf32> to vector<8x192xf32>
    %cst = arith.constant 5.000000e-01 : f32
    %52 = vector.broadcast %cst : f32 to vector<8x192xf32>
    %53 = arith.mulf %52, %51 : vector<8x192xf32>
    %54 = math.tanh %53 : vector<8x192xf32>
    %cst_13 = arith.constant 5.000000e-01 : f32
    %55 = vector.broadcast %cst_13 : f32 to vector<8x192xf32>
    %56 = arith.mulf %55, %54 : vector<8x192xf32>
    %cst_14 = arith.constant 5.000000e-01 : f32
    %57 = vector.broadcast %cst_14 : f32 to vector<8x192xf32>
    %58 = arith.addf %56, %57 : vector<8x192xf32>
    %59 = vector.extract_strided_slice %58 {offsets = [0, 0], sizes = [8, 64], strides = [1, 1]} : vector<8x192xf32> to vector<8x64xf32>
    %60 = vector.extract_strided_slice %58 {offsets = [0, 128], sizes = [8, 64], strides = [1, 1]} : vector<8x192xf32> to vector<8x64xf32>
    %61 = vector.extract_strided_slice %50 {offsets = [0, 192], sizes = [8, 64], strides = [1, 1]} : vector<8x256xf32> to vector<8x64xf32>
    %62 = math.tanh %61 : vector<8x64xf32>
    %63 = arith.mulf %59, %62 : vector<8x64xf32>
    %64 = math.tanh %63 : vector<8x64xf32>
    %65 = arith.mulf %60, %64 : vector<8x64xf32>
    %66 = arith.truncf %65 : vector<8x64xf32> to vector<8x64xbf16>
    %67 = vector.extract_strided_slice %3 {offsets = [0, 0], sizes = [64, 512], strides = [1, 1]} : vector<128x512xbf16> to vector<64x512xbf16>
    %cst_15 = arith.constant dense<0.000000e+00> : vector<8x512xf32>
    %68 = tpu.matmul %66, %67, %cst_15 {dimension_numbers = #tpu.dot_dimension_numbers<[1], [0], [0], [1], [0, 0, 1, 1], [], []>} : vector<8x64xbf16>, vector<64x512xbf16>, vector<8x512xf32> -> vector<8x512xf32>
    %69 = vector.extract_strided_slice %68 {offsets = [0, 256], sizes = [8, 256], strides = [1, 1]} : vector<8x512xf32> to vector<8x256xf32>
    %70 = vector.broadcast %4 : vector<1x256xf32> to vector<8x256xf32>
    %71 = arith.addf %69, %70 : vector<8x256xf32>
    %72 = vector.extract_strided_slice %71 {offsets = [0, 0], sizes = [8, 192], strides = [1, 1]} : vector<8x256xf32> to vector<8x192xf32>
    %cst_16 = arith.constant 5.000000e-01 : f32
    %73 = vector.broadcast %cst_16 : f32 to vector<8x192xf32>
    %74 = arith.mulf %73, %72 : vector<8x192xf32>
    %75 = math.tanh %74 : vector<8x192xf32>
    %cst_17 = arith.constant 5.000000e-01 : f32
    %76 = vector.broadcast %cst_17 : f32 to vector<8x192xf32>
    %77 = arith.mulf %76, %75 : vector<8x192xf32>
    %cst_18 = arith.constant 5.000000e-01 : f32
    %78 = vector.broadcast %cst_18 : f32 to vector<8x192xf32>
    %79 = arith.addf %77, %78 : vector<8x192xf32>
    %80 = vector.extract_strided_slice %79 {offsets = [0, 0], sizes = [8, 64], strides = [1, 1]} : vector<8x192xf32> to vector<8x64xf32>
    %81 = vector.extract_strided_slice %79 {offsets = [0, 128], sizes = [8, 64], strides = [1, 1]} : vector<8x192xf32> to vector<8x64xf32>
    %82 = vector.extract_strided_slice %71 {offsets = [0, 192], sizes = [8, 64], strides = [1, 1]} : vector<8x256xf32> to vector<8x64xf32>
    %83 = math.tanh %82 : vector<8x64xf32>
    %84 = arith.mulf %80, %83 : vector<8x64xf32>
    %85 = math.tanh %84 : vector<8x64xf32>
    %86 = arith.mulf %81, %85 : vector<8x64xf32>
    %87 = vector.extract_strided_slice %0 {offsets = [0, 2], sizes = [8, 1], strides = [1, 1]} : vector<8x16xf32> to vector<8x1xf32>
    %88 = vector.extract_strided_slice %1 {offsets = [0, 0], sizes = [1, 256], strides = [1, 1]} : vector<2x256xf32> to vector<1x256xf32>
    %89 = vector.broadcast %87 : vector<8x1xf32> to vector<8x256xf32>
    %90 = vector.broadcast %88 : vector<1x256xf32> to vector<8x256xf32>
    %91 = arith.mulf %89, %90 : vector<8x256xf32>
    %92 = vector.extract_strided_slice %0 {offsets = [0, 3], sizes = [8, 1], strides = [1, 1]} : vector<8x16xf32> to vector<8x1xf32>
    %93 = vector.extract_strided_slice %1 {offsets = [1, 0], sizes = [1, 256], strides = [1, 1]} : vector<2x256xf32> to vector<1x256xf32>
    %94 = vector.broadcast %92 : vector<8x1xf32> to vector<8x256xf32>
    %95 = vector.broadcast %93 : vector<1x256xf32> to vector<8x256xf32>
    %96 = arith.mulf %94, %95 : vector<8x256xf32>
    %97 = arith.addf %91, %96 : vector<8x256xf32>
    %98 = vector.broadcast %2 : vector<1x256xf32> to vector<8x256xf32>
    %99 = arith.addf %97, %98 : vector<8x256xf32>
    %100 = vector.extract_strided_slice %68 {offsets = [0, 0], sizes = [8, 256], strides = [1, 1]} : vector<8x512xf32> to vector<8x256xf32>
    %101 = arith.addf %99, %100 : vector<8x256xf32>
    %102 = vector.extract_strided_slice %101 {offsets = [0, 0], sizes = [8, 192], strides = [1, 1]} : vector<8x256xf32> to vector<8x192xf32>
    %cst_19 = arith.constant 5.000000e-01 : f32
    %103 = vector.broadcast %cst_19 : f32 to vector<8x192xf32>
    %104 = arith.mulf %103, %102 : vector<8x192xf32>
    %105 = math.tanh %104 : vector<8x192xf32>
    %cst_20 = arith.constant 5.000000e-01 : f32
    %106 = vector.broadcast %cst_20 : f32 to vector<8x192xf32>
    %107 = arith.mulf %106, %105 : vector<8x192xf32>
    %cst_21 = arith.constant 5.000000e-01 : f32
    %108 = vector.broadcast %cst_21 : f32 to vector<8x192xf32>
    %109 = arith.addf %107, %108 : vector<8x192xf32>
    %110 = vector.extract_strided_slice %109 {offsets = [0, 0], sizes = [8, 64], strides = [1, 1]} : vector<8x192xf32> to vector<8x64xf32>
    %111 = vector.extract_strided_slice %109 {offsets = [0, 64], sizes = [8, 64], strides = [1, 1]} : vector<8x192xf32> to vector<8x64xf32>
    %112 = vector.extract_strided_slice %109 {offsets = [0, 128], sizes = [8, 64], strides = [1, 1]} : vector<8x192xf32> to vector<8x64xf32>
    %113 = vector.extract_strided_slice %101 {offsets = [0, 192], sizes = [8, 64], strides = [1, 1]} : vector<8x256xf32> to vector<8x64xf32>
    %114 = math.tanh %113 : vector<8x64xf32>
    %115 = arith.mulf %111, %63 : vector<8x64xf32>
    %116 = arith.mulf %110, %114 : vector<8x64xf32>
    %117 = arith.addf %115, %116 : vector<8x64xf32>
    %118 = math.tanh %117 : vector<8x64xf32>
    %119 = arith.mulf %112, %118 : vector<8x64xf32>
    %120 = tpu.concatenate %119, %86 in 1 : vector<8x64xf32>, vector<8x64xf32> -> vector<8x128xf32>
    %121 = arith.truncf %120 : vector<8x128xf32> to vector<8x128xbf16>
    %cst_22 = arith.constant dense<0.000000e+00> : vector<8x512xf32>
    %122 = tpu.matmul %121, %3, %cst_22 {dimension_numbers = #tpu.dot_dimension_numbers<[1], [0], [0], [1], [0, 0, 1, 1], [], []>} : vector<8x128xbf16>, vector<128x512xbf16>, vector<8x512xf32> -> vector<8x512xf32>
    %123 = vector.extract_strided_slice %122 {offsets = [0, 256], sizes = [8, 256], strides = [1, 1]} : vector<8x512xf32> to vector<8x256xf32>
    %124 = vector.broadcast %4 : vector<1x256xf32> to vector<8x256xf32>
    %125 = arith.addf %123, %124 : vector<8x256xf32>
    %126 = vector.extract_strided_slice %125 {offsets = [0, 0], sizes = [8, 192], strides = [1, 1]} : vector<8x256xf32> to vector<8x192xf32>
    %cst_23 = arith.constant 5.000000e-01 : f32
    %127 = vector.broadcast %cst_23 : f32 to vector<8x192xf32>
    %128 = arith.mulf %127, %126 : vector<8x192xf32>
    %129 = math.tanh %128 : vector<8x192xf32>
    %cst_24 = arith.constant 5.000000e-01 : f32
    %130 = vector.broadcast %cst_24 : f32 to vector<8x192xf32>
    %131 = arith.mulf %130, %129 : vector<8x192xf32>
    %cst_25 = arith.constant 5.000000e-01 : f32
    %132 = vector.broadcast %cst_25 : f32 to vector<8x192xf32>
    %133 = arith.addf %131, %132 : vector<8x192xf32>
    %134 = vector.extract_strided_slice %133 {offsets = [0, 0], sizes = [8, 64], strides = [1, 1]} : vector<8x192xf32> to vector<8x64xf32>
    %135 = vector.extract_strided_slice %133 {offsets = [0, 64], sizes = [8, 64], strides = [1, 1]} : vector<8x192xf32> to vector<8x64xf32>
    %136 = vector.extract_strided_slice %133 {offsets = [0, 128], sizes = [8, 64], strides = [1, 1]} : vector<8x192xf32> to vector<8x64xf32>
    %137 = vector.extract_strided_slice %125 {offsets = [0, 192], sizes = [8, 64], strides = [1, 1]} : vector<8x256xf32> to vector<8x64xf32>
    %138 = math.tanh %137 : vector<8x64xf32>
    %139 = arith.mulf %135, %84 : vector<8x64xf32>
    %140 = arith.mulf %134, %138 : vector<8x64xf32>
    %141 = arith.addf %139, %140 : vector<8x64xf32>
    %142 = math.tanh %141 : vector<8x64xf32>
    %143 = arith.mulf %136, %142 : vector<8x64xf32>
    %144 = vector.extract_strided_slice %0 {offsets = [0, 4], sizes = [8, 1], strides = [1, 1]} : vector<8x16xf32> to vector<8x1xf32>
    %145 = vector.extract_strided_slice %1 {offsets = [0, 0], sizes = [1, 256], strides = [1, 1]} : vector<2x256xf32> to vector<1x256xf32>
    %146 = vector.broadcast %144 : vector<8x1xf32> to vector<8x256xf32>
    %147 = vector.broadcast %145 : vector<1x256xf32> to vector<8x256xf32>
    %148 = arith.mulf %146, %147 : vector<8x256xf32>
    %149 = vector.extract_strided_slice %0 {offsets = [0, 5], sizes = [8, 1], strides = [1, 1]} : vector<8x16xf32> to vector<8x1xf32>
    %150 = vector.extract_strided_slice %1 {offsets = [1, 0], sizes = [1, 256], strides = [1, 1]} : vector<2x256xf32> to vector<1x256xf32>
    %151 = vector.broadcast %149 : vector<8x1xf32> to vector<8x256xf32>
    %152 = vector.broadcast %150 : vector<1x256xf32> to vector<8x256xf32>
    %153 = arith.mulf %151, %152 : vector<8x256xf32>
    %154 = arith.addf %148, %153 : vector<8x256xf32>
    %155 = vector.broadcast %2 : vector<1x256xf32> to vector<8x256xf32>
    %156 = arith.addf %154, %155 : vector<8x256xf32>
    %157 = vector.extract_strided_slice %122 {offsets = [0, 0], sizes = [8, 256], strides = [1, 1]} : vector<8x512xf32> to vector<8x256xf32>
    %158 = arith.addf %156, %157 : vector<8x256xf32>
    %159 = vector.extract_strided_slice %158 {offsets = [0, 0], sizes = [8, 192], strides = [1, 1]} : vector<8x256xf32> to vector<8x192xf32>
    %cst_26 = arith.constant 5.000000e-01 : f32
    %160 = vector.broadcast %cst_26 : f32 to vector<8x192xf32>
    %161 = arith.mulf %160, %159 : vector<8x192xf32>
    %162 = math.tanh %161 : vector<8x192xf32>
    %cst_27 = arith.constant 5.000000e-01 : f32
    %163 = vector.broadcast %cst_27 : f32 to vector<8x192xf32>
    %164 = arith.mulf %163, %162 : vector<8x192xf32>
    %cst_28 = arith.constant 5.000000e-01 : f32
    %165 = vector.broadcast %cst_28 : f32 to vector<8x192xf32>
    %166 = arith.addf %164, %165 : vector<8x192xf32>
    %167 = vector.extract_strided_slice %166 {offsets = [0, 0], sizes = [8, 64], strides = [1, 1]} : vector<8x192xf32> to vector<8x64xf32>
    %168 = vector.extract_strided_slice %166 {offsets = [0, 64], sizes = [8, 64], strides = [1, 1]} : vector<8x192xf32> to vector<8x64xf32>
    %169 = vector.extract_strided_slice %166 {offsets = [0, 128], sizes = [8, 64], strides = [1, 1]} : vector<8x192xf32> to vector<8x64xf32>
    %170 = vector.extract_strided_slice %158 {offsets = [0, 192], sizes = [8, 64], strides = [1, 1]} : vector<8x256xf32> to vector<8x64xf32>
    %171 = math.tanh %170 : vector<8x64xf32>
    %172 = arith.mulf %168, %117 : vector<8x64xf32>
    %173 = arith.mulf %167, %171 : vector<8x64xf32>
    %174 = arith.addf %172, %173 : vector<8x64xf32>
    %175 = math.tanh %174 : vector<8x64xf32>
    %176 = arith.mulf %169, %175 : vector<8x64xf32>
    %177 = tpu.concatenate %176, %143 in 1 : vector<8x64xf32>, vector<8x64xf32> -> vector<8x128xf32>
    %178 = arith.truncf %177 : vector<8x128xf32> to vector<8x128xbf16>
    %cst_29 = arith.constant dense<0.000000e+00> : vector<8x512xf32>
    %179 = tpu.matmul %178, %3, %cst_29 {dimension_numbers = #tpu.dot_dimension_numbers<[1], [0], [0], [1], [0, 0, 1, 1], [], []>} : vector<8x128xbf16>, vector<128x512xbf16>, vector<8x512xf32> -> vector<8x512xf32>
    %180 = vector.extract_strided_slice %179 {offsets = [0, 256], sizes = [8, 256], strides = [1, 1]} : vector<8x512xf32> to vector<8x256xf32>
    %181 = vector.broadcast %4 : vector<1x256xf32> to vector<8x256xf32>
    %182 = arith.addf %180, %181 : vector<8x256xf32>
    %183 = vector.extract_strided_slice %182 {offsets = [0, 0], sizes = [8, 192], strides = [1, 1]} : vector<8x256xf32> to vector<8x192xf32>
    %cst_30 = arith.constant 5.000000e-01 : f32
    %184 = vector.broadcast %cst_30 : f32 to vector<8x192xf32>
    %185 = arith.mulf %184, %183 : vector<8x192xf32>
    %186 = math.tanh %185 : vector<8x192xf32>
    %cst_31 = arith.constant 5.000000e-01 : f32
    %187 = vector.broadcast %cst_31 : f32 to vector<8x192xf32>
    %188 = arith.mulf %187, %186 : vector<8x192xf32>
    %cst_32 = arith.constant 5.000000e-01 : f32
    %189 = vector.broadcast %cst_32 : f32 to vector<8x192xf32>
    %190 = arith.addf %188, %189 : vector<8x192xf32>
    %191 = vector.extract_strided_slice %190 {offsets = [0, 0], sizes = [8, 64], strides = [1, 1]} : vector<8x192xf32> to vector<8x64xf32>
    %192 = vector.extract_strided_slice %190 {offsets = [0, 64], sizes = [8, 64], strides = [1, 1]} : vector<8x192xf32> to vector<8x64xf32>
    %193 = vector.extract_strided_slice %190 {offsets = [0, 128], sizes = [8, 64], strides = [1, 1]} : vector<8x192xf32> to vector<8x64xf32>
    %194 = vector.extract_strided_slice %182 {offsets = [0, 192], sizes = [8, 64], strides = [1, 1]} : vector<8x256xf32> to vector<8x64xf32>
    %195 = math.tanh %194 : vector<8x64xf32>
    %196 = arith.mulf %192, %141 : vector<8x64xf32>
    %197 = arith.mulf %191, %195 : vector<8x64xf32>
    %198 = arith.addf %196, %197 : vector<8x64xf32>
    %199 = math.tanh %198 : vector<8x64xf32>
    %200 = arith.mulf %193, %199 : vector<8x64xf32>
    %201 = vector.extract_strided_slice %0 {offsets = [0, 6], sizes = [8, 1], strides = [1, 1]} : vector<8x16xf32> to vector<8x1xf32>
    %202 = vector.extract_strided_slice %1 {offsets = [0, 0], sizes = [1, 256], strides = [1, 1]} : vector<2x256xf32> to vector<1x256xf32>
    %203 = vector.broadcast %201 : vector<8x1xf32> to vector<8x256xf32>
    %204 = vector.broadcast %202 : vector<1x256xf32> to vector<8x256xf32>
    %205 = arith.mulf %203, %204 : vector<8x256xf32>
    %206 = vector.extract_strided_slice %0 {offsets = [0, 7], sizes = [8, 1], strides = [1, 1]} : vector<8x16xf32> to vector<8x1xf32>
    %207 = vector.extract_strided_slice %1 {offsets = [1, 0], sizes = [1, 256], strides = [1, 1]} : vector<2x256xf32> to vector<1x256xf32>
    %208 = vector.broadcast %206 : vector<8x1xf32> to vector<8x256xf32>
    %209 = vector.broadcast %207 : vector<1x256xf32> to vector<8x256xf32>
    %210 = arith.mulf %208, %209 : vector<8x256xf32>
    %211 = arith.addf %205, %210 : vector<8x256xf32>
    %212 = vector.broadcast %2 : vector<1x256xf32> to vector<8x256xf32>
    %213 = arith.addf %211, %212 : vector<8x256xf32>
    %214 = vector.extract_strided_slice %179 {offsets = [0, 0], sizes = [8, 256], strides = [1, 1]} : vector<8x512xf32> to vector<8x256xf32>
    %215 = arith.addf %213, %214 : vector<8x256xf32>
    %216 = vector.extract_strided_slice %215 {offsets = [0, 0], sizes = [8, 192], strides = [1, 1]} : vector<8x256xf32> to vector<8x192xf32>
    %cst_33 = arith.constant 5.000000e-01 : f32
    %217 = vector.broadcast %cst_33 : f32 to vector<8x192xf32>
    %218 = arith.mulf %217, %216 : vector<8x192xf32>
    %219 = math.tanh %218 : vector<8x192xf32>
    %cst_34 = arith.constant 5.000000e-01 : f32
    %220 = vector.broadcast %cst_34 : f32 to vector<8x192xf32>
    %221 = arith.mulf %220, %219 : vector<8x192xf32>
    %cst_35 = arith.constant 5.000000e-01 : f32
    %222 = vector.broadcast %cst_35 : f32 to vector<8x192xf32>
    %223 = arith.addf %221, %222 : vector<8x192xf32>
    %224 = vector.extract_strided_slice %223 {offsets = [0, 0], sizes = [8, 64], strides = [1, 1]} : vector<8x192xf32> to vector<8x64xf32>
    %225 = vector.extract_strided_slice %223 {offsets = [0, 64], sizes = [8, 64], strides = [1, 1]} : vector<8x192xf32> to vector<8x64xf32>
    %226 = vector.extract_strided_slice %223 {offsets = [0, 128], sizes = [8, 64], strides = [1, 1]} : vector<8x192xf32> to vector<8x64xf32>
    %227 = vector.extract_strided_slice %215 {offsets = [0, 192], sizes = [8, 64], strides = [1, 1]} : vector<8x256xf32> to vector<8x64xf32>
    %228 = math.tanh %227 : vector<8x64xf32>
    %229 = arith.mulf %225, %174 : vector<8x64xf32>
    %230 = arith.mulf %224, %228 : vector<8x64xf32>
    %231 = arith.addf %229, %230 : vector<8x64xf32>
    %232 = math.tanh %231 : vector<8x64xf32>
    %233 = arith.mulf %226, %232 : vector<8x64xf32>
    %234 = tpu.concatenate %233, %200 in 1 : vector<8x64xf32>, vector<8x64xf32> -> vector<8x128xf32>
    %235 = arith.truncf %234 : vector<8x128xf32> to vector<8x128xbf16>
    %236 = vector.extract_strided_slice %3 {offsets = [0, 256], sizes = [128, 256], strides = [1, 1]} : vector<128x512xbf16> to vector<128x256xbf16>
    %cst_36 = arith.constant dense<0.000000e+00> : vector<8x256xf32>
    %237 = tpu.matmul %235, %236, %cst_36 {dimension_numbers = #tpu.dot_dimension_numbers<[1], [0], [0], [1], [0, 0, 1, 1], [], []>} : vector<8x128xbf16>, vector<128x256xbf16>, vector<8x256xf32> -> vector<8x256xf32>
    %238 = vector.broadcast %4 : vector<1x256xf32> to vector<8x256xf32>
    %239 = arith.addf %237, %238 : vector<8x256xf32>
    %240 = vector.extract_strided_slice %239 {offsets = [0, 0], sizes = [8, 192], strides = [1, 1]} : vector<8x256xf32> to vector<8x192xf32>
    %cst_37 = arith.constant 5.000000e-01 : f32
    %241 = vector.broadcast %cst_37 : f32 to vector<8x192xf32>
    %242 = arith.mulf %241, %240 : vector<8x192xf32>
    %243 = math.tanh %242 : vector<8x192xf32>
    %cst_38 = arith.constant 5.000000e-01 : f32
    %244 = vector.broadcast %cst_38 : f32 to vector<8x192xf32>
    %245 = arith.mulf %244, %243 : vector<8x192xf32>
    %cst_39 = arith.constant 5.000000e-01 : f32
    %246 = vector.broadcast %cst_39 : f32 to vector<8x192xf32>
    %247 = arith.addf %245, %246 : vector<8x192xf32>
    %248 = vector.extract_strided_slice %247 {offsets = [0, 0], sizes = [8, 64], strides = [1, 1]} : vector<8x192xf32> to vector<8x64xf32>
    %249 = vector.extract_strided_slice %247 {offsets = [0, 64], sizes = [8, 64], strides = [1, 1]} : vector<8x192xf32> to vector<8x64xf32>
    %250 = vector.extract_strided_slice %247 {offsets = [0, 128], sizes = [8, 64], strides = [1, 1]} : vector<8x192xf32> to vector<8x64xf32>
    %251 = vector.extract_strided_slice %239 {offsets = [0, 192], sizes = [8, 64], strides = [1, 1]} : vector<8x256xf32> to vector<8x64xf32>
    %252 = math.tanh %251 : vector<8x64xf32>
    %253 = arith.mulf %249, %198 : vector<8x64xf32>
    %254 = arith.mulf %248, %252 : vector<8x64xf32>
    %255 = arith.addf %253, %254 : vector<8x64xf32>
    %256 = math.tanh %255 : vector<8x64xf32>
    %257 = arith.mulf %250, %256 : vector<8x64xf32>
    %258 = arith.truncf %257 : vector<8x64xf32> to vector<8x64xbf16>
    %c0_40 = arith.constant 0 : index
    %c0_41 = arith.constant 0 : index
    %259 = vector.load %arg6[%c0_40, %c0_41] : memref<64x30xbf16, #tpu.memory_space<vmem>>, vector<64x30xbf16>
    %cst_42 = arith.constant dense<0.000000e+00> : vector<8x30xf32>
    %260 = tpu.matmul %258, %259, %cst_42 {dimension_numbers = #tpu.dot_dimension_numbers<[1], [0], [0], [1], [0, 0, 1, 1], [], []>} : vector<8x64xbf16>, vector<64x30xbf16>, vector<8x30xf32> -> vector<8x30xf32>
    %261 = arith.addf %37, %260 : vector<8x30xf32>
    %cst_43 = arith.constant 0.000000e+00 : f32
    %262 = vector.broadcast %cst_43 : f32 to vector<8x30xf32>
    %263 = arith.maximumf %261, %262 : vector<8x30xf32>
    %264 = arith.truncf %263 : vector<8x30xf32> to vector<8x30xbf16>
    %c0_44 = arith.constant 0 : index
    %c0_45 = arith.constant 0 : index
    %265 = vector.load %arg9[%c0_44, %c0_45] : memref<30x10xbf16, #tpu.memory_space<vmem>>, vector<30x10xbf16>
    %cst_46 = arith.constant dense<0.000000e+00> : vector<8x10xf32>
    %266 = tpu.matmul %264, %265, %cst_46 {dimension_numbers = #tpu.dot_dimension_numbers<[1], [0], [0], [1], [0, 0, 1, 1], [], []>} : vector<8x30xbf16>, vector<30x10xbf16>, vector<8x10xf32> -> vector<8x10xf32>
    %c0_47 = arith.constant 0 : index
    %c0_48 = arith.constant 0 : index
    %267 = vector.load %arg10[%c0_47, %c0_48] : memref<1x10xf32, #tpu.memory_space<vmem>>, vector<1x10xf32>
    %268 = vector.broadcast %267 : vector<1x10xf32> to vector<8x10xf32>
    %269 = arith.addf %266, %268 : vector<8x10xf32>
    %cst_49 = arith.constant 0.000000e+00 : f32
    %270 = vector.broadcast %cst_49 : f32 to vector<8x10xf32>
    %271 = arith.maximumf %269, %270 : vector<8x10xf32>
    %c0_50 = arith.constant 0 : index
    %c0_51 = arith.constant 0 : index
    %272 = vector.load %arg11[%c0_50, %c0_51] : memref<8x10xbf16, #tpu.memory_space<vmem>>, vector<8x10xbf16>
    %273 = arith.truncf %271 : vector<8x10xf32> to vector<8x10xbf16>
    "tpu.trace_start"() <{level = 10 : i32, message = "ok,bk->ob"}> : () -> ()
    %cst_52 = arith.constant dense<0.000000e+00> : vector<8x8xf32>
    %274 = tpu.matmul %272, %273, %cst_52 {dimension_numbers = #tpu.dot_dimension_numbers<[1], [1], [0], [0], [0, 0, 1, 0], [], []>} : vector<8x10xbf16>, vector<8x10xbf16>, vector<8x8xf32> -> vector<8x8xf32>
    "tpu.trace_stop"() : () -> ()
    %c0_53 = arith.constant 0 : index
    %c0_54 = arith.constant 0 : index
    %275 = vector.load %arg12[%c0_53, %c0_54] : memref<1x1xf32, #tpu.memory_space<vmem>>, vector<1x1xf32>
    %276 = vector.broadcast %275 : vector<1x1xf32> to vector<8x8xf32>
    %277 = arith.addf %274, %276 : vector<8x8xf32>
    %c0_55 = arith.constant 0 : index
    %c0_56 = arith.constant 0 : index
    %278 = vector.load %arg13[%c0_55, %c0_56] : memref<8x8xf32, #tpu.memory_space<vmem>>, vector<8x8xf32>
    tpu.vector_store %arg13[%c0_55, %c0_56], %277 {strides = array<i32>} : memref<8x8xf32, #tpu.memory_space<vmem>>, vector<8x8xf32>,
    return
  }
  func.func @transform_0(%arg0: i32) -> (i32, i32) {
    %c0_i32 = arith.constant 0 : i32
    %c0_i32_0 = arith.constant 0 : i32
    return %arg0, %c0_i32 : i32, i32
  }
  func.func @transform_1(%arg0: i32) -> (i32, i32) {
    %c0_i32 = arith.constant 0 : i32
    %c0_i32_0 = arith.constant 0 : i32
    %c0_i32_1 = arith.constant 0 : i32
    return %c0_i32, %c0_i32_0 : i32, i32
  }
  func.func @transform_2(%arg0: i32) -> (i32, i32) {
    %c0_i32 = arith.constant 0 : i32
    %c0_i32_0 = arith.constant 0 : i32
    %c0_i32_1 = arith.constant 0 : i32
    return %c0_i32, %c0_i32_0 : i32, i32
  }
  func.func @transform_3(%arg0: i32) -> (i32, i32) {
    %c0_i32 = arith.constant 0 : i32
    %c0_i32_0 = arith.constant 0 : i32
    %c0_i32_1 = arith.constant 0 : i32
    return %c0_i32, %c0_i32_0 : i32, i32
  }
  func.func @transform_4(%arg0: i32) -> (i32, i32) {
    %c0_i32 = arith.constant 0 : i32
    %c0_i32_0 = arith.constant 0 : i32
    %c0_i32_1 = arith.constant 0 : i32
    return %c0_i32, %c0_i32_0 : i32, i32
  }
  func.func @transform_5(%arg0: i32) -> (i32, i32) {
    %c0_i32 = arith.constant 0 : i32
    %c0_i32_0 = arith.constant 0 : i32
    %c0_i32_1 = arith.constant 0 : i32
    return %c0_i32, %c0_i32_0 : i32, i32
  }
  func.func @transform_6(%arg0: i32) -> (i32, i32) {
    %c0_i32 = arith.constant 0 : i32
    %c0_i32_0 = arith.constant 0 : i32
    %c0_i32_1 = arith.constant 0 : i32
    return %c0_i32, %c0_i32_0 : i32, i32
  }
  func.func @transform_7(%arg0: i32) -> (i32, i32) {
    %c0_i32 = arith.constant 0 : i32
    %c0_i32_0 = arith.constant 0 : i32
    %c0_i32_1 = arith.constant 0 : i32
    return %c0_i32, %c0_i32_0 : i32, i32
  }
  func.func @transform_8(%arg0: i32) -> (i32, i32) {
    %c0_i32 = arith.constant 0 : i32
    %c0_i32_0 = arith.constant 0 : i32
    %c0_i32_1 = arith.constant 0 : i32
    return %c0_i32, %c0_i32_0 : i32, i32
  }
  func.func @transform_9(%arg0: i32) -> (i32, i32) {
    %c0_i32 = arith.constant 0 : i32
    %c0_i32_0 = arith.constant 0 : i32
    %c0_i32_1 = arith.constant 0 : i32
    return %c0_i32, %c0_i32_0 : i32, i32
  }
  func.func @transform_10(%arg0: i32) -> (i32, i32) {
    %c0_i32 = arith.constant 0 : i32
    %c0_i32_0 = arith.constant 0 : i32
    %c0_i32_1 = arith.constant 0 : i32
    return %c0_i32, %c0_i32_0 : i32, i32
  }
  func.func @transform_11(%arg0: i32) -> (i32, i32) {
    %c0_i32 = arith.constant 0 : i32
    %c0_i32_0 = arith.constant 0 : i32
    %c0_i32_1 = arith.constant 0 : i32
    return %c0_i32, %c0_i32_0 : i32, i32
  }
  func.func @transform_12(%arg0: i32) -> (i32, i32) {
    %c0_i32 = arith.constant 0 : i32
    %c0_i32_0 = arith.constant 0 : i32
    return %c0_i32, %arg0 : i32, i32
  }
}

</mosaic_0001>

<bundles_post_ra>
// kernel: value_network_forward.1
= control target key start
LH: loop header
LB: loop body
LE: loop exit
PB: predicated region body
PF: predicated region fallthrough
CT: control target
= control target key end

     0   :  { %s1887_s0 = inlined_call_operand.vmem [shape: f32[8,16], index: 0, kind: input, shape index: {}]   ;;  %s1888_s1 = inlined_call_operand.vmem [shape: f32[2,256], index: 1, kind: input, shape index: {}]   ;;  %s1889_s2 = inlined_call_operand.vmem [shape: f32[1,256], index: 2, kind: input, shape index: {}]   ;;  %s1890_s3 = inlined_call_operand.hbm [shape: bf16[128,512], index: 3, kind: input, shape index: {}]   ;;  %s1891_s4 = inlined_call_operand.vmem [shape: f32[1,256], index: 4, kind: input, shape index: {}]   ;;  %s1892_s5 = inlined_call_operand.vmem [shape: bf16[64,30], index: 5, kind: input, shape index: {}]   ;;  %s1893_s6 = inlined_call_operand.vmem [shape: f32[5,30], index: 6, kind: input, shape index: {}]   ;;  %s1894_s7 = inlined_call_operand.vmem [shape: f32[1,30], index: 7, kind: input, shape index: {}]   ;;  %s1895_s8 = inlined_call_operand.vmem [shape: bf16[30,10], index: 8, kind: input, shape index: {}]   ;;  %s1896_s9 = inlined_call_operand.vmem [shape: f32[1,10], index: 9, kind: input, shape index: {}]   ;;  %s1897_s10 = inlined_call_operand.vmem [shape: bf16[8,10], index: 10, kind: input, shape index: {}]   ;;  %s1898_s11 = inlined_call_operand.<no memory space> [shape: f32[1,1], index: 11, kind: input, shape index: {}]   ;;  %s1899_s12 = inlined_call_operand.vmem [shape: f32[8,8], index: 12, kind: output, shape index: {}]  }
   0x1   :  { %v17_v0 = vstv %s1898_s11 }
   0x2   :  { %18 = vst [vmem:[#allocation2] sm:$0x1] %v17_v0 }
   0x3   :  { %19 = vsyncpa [#allocation4], 0  ;;  %s1429_s23 = smov [#allocation3]   ;;  %s1405_s27 = scalar_lea.hbm %s1890_s3, 4096 }
   0x4   :  { %s31_s24 = sshll.u32 %s1429_s23, 4  ;;  %p1406_p0 = scmp.ne.s32.totalorder %s1890_s3, %s1405_s27  ;;  %s32_s24 = int_to_ptr.vmem [resolvable:$true] %s31_s24 }
   0x5   :  { %p1409_p1 = scmp.lt.u32.totalorder %s1405_s27, %s1890_s3 }
   0x7   :  { %p1411_p2 = pnand %p1409_p1, %p1406_p0 }
   0x9   :  { %1414 = shalt.err (!%p1411_p2)
}
   0xa   :  { %s1415_s11 = scalar_lea.vmem %s32_s24, 4096  ;;  %p1420_p4 = scmp.lt.s32.totalorder %s32_s24, %s32_s24 }
   0xb   :  { %p1416_p3 = scmp.ne.s32.totalorder %s32_s24, %s1415_s11  ;;  %p1421_p5 = scmp.lt.s32.totalorder %s1415_s11, %s1415_s11 }
   0xd   :  { %p1422_p6 = por %p1421_p5, %p1420_p4 }
   0xf   :  { %p1423_p7 = pnand %p1422_p6, %p1416_p3 }
  0x11   :  { %1426 = shalt.err (!%p1423_p7)
}
  0x12   :  { %s1430_s14 = smov 256   ;;  %s1431_s15 = smov 16  }
  0x13   :  { %37 = dma.hbm_to_vmem [thread:$0]  %s1890_s3, 4096, %s32_s24, [#allocation4], %s1430_s14, %s1430_s14, %s1431_s15  }
  0x14   :  { %1427 = dma.done.wait [#allocation4], 4096  }
  0x15   :  { %1428 = vsyncadd [#allocation4], 4294963200  ;;  %v1432_v1 = vmov 0   ;;  %v1534_v2 = vld [vmem:[%s1887_s0] sm:$0xff]  ;;  %v1433_v3 = vmov 1   ;;  %v1434_v4 = vmov 2   ;;  %v101_v5 = vlaneseq }
  0x16   :  { %1271 = vset.pattern.permute.xlu0 %v1432_v1  ;;  %350 = vmatprep.mubr.bf16.mxu0 %v1432_v1  ;;  %v59_v9 = vld [vmem:[%s1888_s1] sm:$0xf]  ;;  %v1570_v24 = vld [vmem:[#allocation3 + $0x4] ss:$16 sps:$4 sm:$0xff]   ;;  %v1576_v27 = vld [vmem:[#allocation3 + $0x8] ss:$16 sps:$4 sm:$0xff]  }
  0x17   :  { %391 = vmatprep.mubr.bf16.mxu1 %v1432_v1  ;;  %154 = vperm.xlu0 %1271, %v1534_v2   ;;  %v1538_v6 = vshrl.u32 %v101_v5, 7  ;;  %v60_v17 = vld [vmem:[%s1889_s2] sm:$0x3]  ;;  %v1580_v28 = vld [vmem:[#allocation3 + $0x24] ss:$16 sps:$4 sm:$0xff]   ;;  %s1435_s2 = smov 64  }
  0x18   :  { %1273 = vset.pattern.permute.xlu1 %v1434_v4  ;;  %v1572_v25 = vld [vmem:[#allocation3 + $0xc] ss:$16 sps:$4 sm:$0xff]   ;;  %v1574_v26 = vld [vmem:[#allocation3] ss:$16 sps:$4 sm:$0xff]   ;;  %318 = vmatprep.subr.bf16.mxu0 %v1570_v24  ;;  %v1588_v31 = vld [vmem:[#allocation3 + $0x28] ss:$16 sps:$4 sm:$0xff]  }
  0x19   :  { %v129_v7 = vsub.s32 2, %v1538_v6  ;;  %v139_v8 = vsub.s32 3, %v1538_v6  ;;  %v1550_v12 = vsub.s32 0, %v1538_v6  ;;  %v1553_v14 = vsub.s32 1, %v1538_v6  ;;  %359 = vmatprep.subr.bf16.mxu1 %v1572_v25  ;;  %v1582_v29 = vld [vmem:[#allocation3 + $0x2c] ss:$16 sps:$4 sm:$0xff]   ;;  %319 = vmatpush1.bf16.msra.mxu0 %v1574_v26 }
  0x1a   :  { %360 = vmatpush1.bf16.msra.mxu1 %v1576_v27  ;;  %v1586_v30 = vld [vmem:[#allocation3 + $0x20] ss:$16 sps:$4 sm:$0xff]   ;;  %320 = vmatprep.subr.bf16.mxu0 %v1580_v28  ;;  %v1592_v32 = vld [vmem:[#allocation3 + $0x44] ss:$16 sps:$4 sm:$0xff]   ;;  %v1594_v33 = vld [vmem:[#allocation3 + $0x4c] ss:$16 sps:$4 sm:$0xff]  }
  0x1b   :  { %1272 = vset.pattern.permute.xlu0 %v1433_v3  ;;  %v165_v10 = vrot.slane %v59_v9, %v129_v7  ;;  %v189_v11 = vrot.slane %v59_v9, %v139_v8  ;;  %v1566_v20 = vrot.slane %v60_v17, %v1553_v14  ;;  %361 = vmatprep.subr.bf16.mxu1 %v1582_v29  ;;  %v1598_v34 = vld [vmem:[#allocation3 + $0x40] ss:$16 sps:$4 sm:$0xff]   ;;  %v1600_v35 = vld [vmem:[#allocation3 + $0x48] ss:$16 sps:$4 sm:$0xff]   ;;  %v1604_v36 = vld [vmem:[#allocation3 + $0x64] ss:$16 sps:$4 sm:$0xff]  }
  0x1c   :  { %179 = vperm.xlu0 %1272, %v1534_v2   ;;  %v1606_v37 = vld [vmem:[#allocation3 + $0x6c] ss:$16 sps:$4 sm:$0xff]   ;;  %v1610_v38 = vld [vmem:[#allocation3 + $0x60] ss:$16 sps:$4 sm:$0xff]   ;;  %v1612_v39 = vld [vmem:[#allocation3 + $0x68] ss:$16 sps:$4 sm:$0xff]   ;;  %v185_v42 = vrot.slane %v59_v9, %v1553_v14  ;;  %v161_v43 = vrot.slane %v59_v9, %v1550_v12  ;;  %v1634_v48 = vrot.slane %v60_v17, %v1550_v12 }
  0x1d   :  { %v1556_v15 = vrot.slane %v165_v10, %v1550_v12  ;;  %v1559_v16 = vrot.slane %v189_v11, %v1553_v14  ;;  %321 = vmatpush1.bf16.msra.mxu0 %v1586_v30  ;;  %v1436_v41 = vmov 3   ;;  %vm314_vm0 = vcmask 523264   ;;  %v93_v17 = vld [vmem:[%s1891_s4] sm:$0x3] }
  0x1e   :  { %362 = vmatpush1.bf16.msra.mxu1 %v1588_v31  ;;  %322 = vmatprep.subr.bf16.mxu0 %v1592_v32  ;;  %v1626_v44 = vrot.slane %v185_v42, %v1553_v14  ;;  %v1629_v45 = vrot.slane %v161_v43, %v1550_v12  ;;  %v1666_v42 = vrot.slane %v93_v17, %v1553_v14  ;;  %vm1442_vm1 = vmmov 0  }
  0x1f   :  { %363 = vmatprep.subr.bf16.mxu1 %v1594_v33  ;;  %vm1059_vm2 = vcmask 1046528   ;;  %vm1055_vm3 = vcmask 244736   ;;  %vm1116_vm4 = vcmask 80896   ;;  %vm1163_vm5 = vcmask 64512  }
  0x21   :  { %323 = vmatpush1.bf16.msra.mxu0 %v1598_v34 }
  0x22   :  { %364 = vmatpush1.bf16.msra.mxu1 %v1600_v35  ;;  %324 = vmatprep.subr.bf16.mxu0 %v1604_v36 }
  0x23   :  { %365 = vmatprep.subr.bf16.mxu1 %v1606_v37 }
  0x25   :  { %325 = vmatpush1.bf16.msra.mxu0 %v1610_v38 }
  0x26   :  { %366 = vmatpush1.bf16.msra.mxu1 %v1612_v39  ;;  %563 = vmatprep.subr.bf16.mxu0 %v1570_v24 }
  0x27   :  { %604 = vmatprep.subr.bf16.mxu1 %v1572_v25 }
  0x96   :  { %v155_v13 = vpop.permute.xlu0 %154 }
  0x97   :  { %v177_v19 = vmul.f32 %v1556_v15, %v155_v13  ;;  %v176_v47 = vmul.f32 %v1629_v45, %v155_v13 }
  0x9b   :  { %v180_v18 = vpop.permute.xlu0 %179 }
  0x9c   :  { %v201_v21 = vmul.f32 %v1559_v16, %v180_v18  ;;  %v200_v46 = vmul.f32 %v1626_v44, %v180_v18 }
  0x9e   :  { %v203_v22 = vadd.f32 %v201_v21, %v177_v19  ;;  %v202_v49 = vadd.f32 %v200_v46, %v176_v47 }
  0xa0   :  { %v216_v23 = vadd.f32 %v1566_v20, %v203_v22  ;;  %v215_v50 = vadd.f32 %v1634_v48, %v202_v49 }
  0xa2   :  { %1340 = vtanh.f32 %v216_v23  ;;  %v217_v51 = vmul.f32 0.5, %v215_v50  ;;  %v218_v52 = vmul.f32 0.5, %v216_v23 }
  0xa4   :  { %1342 = vtanh.f32 %v217_v51 }
  0xa5   :  { %1344 = vtanh.f32 %v218_v52 }
  0xac   :  { %v1341_v40 = vpop.eup %1340 }
  0xad   :  { %227 = vrot.lane.b32.xlu1 %v1341_v40, %s1435_s2 }
  0xae   :  { %v1343_v53 = vpop.eup %1342 }
  0xaf   :  { %v221_v54 = vmul.f32 0.5, %v1343_v53  ;;  %v1345_v58 = vpop.eup %1344 }
  0xb0   :  { %v222_v59 = vmul.f32 0.5, %v1345_v58 }
  0xb1   :  { %430 = vperm.xlu1 %1273, %v1534_v2   ;;  %v223_v55 = vadd.f32 0.5, %v221_v54  ;;  %v1675_v54 = vrot.slane %v93_v17, %v1550_v12  ;;  %v1681_v17 = vld [vmem:[#allocation3 + $0x84] ss:$16 sps:$4 sm:$0xff]  }
  0xb2   :  { %v224_v60 = vadd.f32 0.5, %v222_v59 }
  0xb5   :  { %1274 = vset.pattern.permute.xlu1 %v1436_v41 }
  0xb6   :  { %436 = vperm.xlu1 %1274, %v1534_v2  }
 0x11f   :  { %v228_v56 = vpop.permute.xlu1 %227 }
 0x120   :  { %v230_v57 = vmul.f32 %v228_v56, %v223_v55 }
 0x122   :  { %1346 = vtanh.f32 %v230_v57  ;;  %457 = vrot.lane.b32.xlu1 %v230_v57, %s1435_s2 }
 0x12c   :  { %v1347_v61 = vpop.eup %1346 }
 0x12d   :  { %v232_v62 = vmul.f32 %v1347_v61, %v224_v60 }
 0x12f   :  { %v233_v63 = vpack.c.bf16 %v232_v62, %v232_v62 }
 0x130   :  { %v431_v0 = vpop.permute.xlu1 %430 }
 0x131   :  { %1187 = vmatmul.mubr.msk.bf16.vlgmr.msra.gmra.mrb[0].mxu0 %vm314_vm0, %v233_v63  ;;  %1188 = vmatmul.mubr.msk.bf16.vlgmr.msra.gmra.mrb[0].mxu1 %vm314_vm0, %v233_v63  ;;  %v433_v4 = vmul.f32 %v431_v0, %v1629_v45  ;;  %v434_v9 = vmul.f32 %v431_v0, %v1556_v15 }
 0x132   :  { %564 = vmatpush1.bf16.msra.mxu0 %v1574_v26  ;;  %605 = vmatpush1.bf16.msra.mxu1 %v1576_v27 }
 0x133   :  { %565 = vmatprep.subr.bf16.mxu0 %v1580_v28  ;;  %606 = vmatprep.subr.bf16.mxu1 %v1582_v29 }
 0x134   :  { %595 = vmatprep.mubr.bf16.mxu0 %v1432_v1  ;;  %636 = vmatprep.mubr.bf16.mxu1 %v1432_v1 }
 0x135   :  { %v437_v3 = vpop.permute.xlu1 %436 }
 0x136   :  { %566 = vmatpush1.bf16.msra.mxu0 %v1586_v30  ;;  %607 = vmatpush1.bf16.msra.mxu1 %v1588_v31  ;;  %v439_v5 = vmul.f32 %v437_v3, %v1626_v44  ;;  %v440_v10 = vmul.f32 %v437_v3, %v1559_v16 }
 0x137   :  { %567 = vmatprep.subr.bf16.mxu0 %v1592_v32  ;;  %608 = vmatprep.subr.bf16.mxu1 %v1594_v33 }
 0x138   :  { %v441_v11 = vadd.f32 %v439_v5, %v433_v4  ;;  %v442_v13 = vadd.f32 %v440_v10, %v434_v9  ;;  %v1437_v5 = vmov 4  }
 0x139   :  { %1275 = vset.pattern.permute.xlu0 %v1437_v5 }
 0x13a   :  { %568 = vmatpush1.bf16.msra.mxu0 %v1598_v34  ;;  %609 = vmatpush1.bf16.msra.mxu1 %v1600_v35  ;;  %v443_v18 = vadd.f32 %v441_v11, %v1634_v48  ;;  %v444_v22 = vadd.f32 %v442_v13, %v1566_v20  ;;  %v1679_v13 = vld [vmem:[#allocation3 + $0x80] ss:$16 sps:$4 sm:$0xff]  }
 0x13b   :  { %569 = vmatprep.subr.bf16.mxu0 %v1604_v36  ;;  %610 = vmatprep.subr.bf16.mxu1 %v1606_v37 }
 0x13e   :  { %570 = vmatpush1.bf16.msra.mxu0 %v1610_v38  ;;  %611 = vmatpush1.bf16.msra.mxu1 %v1612_v39 }
 0x13f   :  { %571 = vmatprep.subr.bf16.mxu0 %v1681_v17 }
 0x142   :  { %572 = vmatpush1.bf16.msra.mxu0 %v1679_v13 }
 0x204   :  { %v352_v19 = vpop.f32.mrb[0].mxu0  ;;  %v393_v21 = vpop.f32.mrb[0].mxu1 }
 0x205   :  { %v445_v23 = vadd.f32 %v443_v18, %v352_v19  ;;  %v354_v40 = vpop.f32.mrb[1].mxu0  ;;  %v395_v41 = vpop.f32.mrb[1].mxu1  ;;  %v411_v56 = vadd.f32 %v1675_v54, %v393_v21  ;;  %v1683_v18 = vld [vmem:[#allocation3 + $0x88] ss:$16 sps:$4 sm:$0xff]   ;;  %v1685_v19 = vld [vmem:[#allocation3 + $0x8c] ss:$16 sps:$4 sm:$0xff]  }
 0x206   :  { %v1668_v43 = vadd.f32 %v444_v22, %v354_v40  ;;  %v356_v46 = vpop.f32.mrb[2].mxu0  ;;  %v397_v47 = vpop.f32.mrb[2].mxu1  ;;  %v412_v51 = vadd.f32 %v1666_v42, %v395_v41  ;;  %v1687_v21 = vld [vmem:[#allocation3 + $0xa4] ss:$16 sps:$4 sm:$0xff]   ;;  %612 = vmatprep.subr.bf16.mxu1 %v1685_v19  ;;  %v1694_v40 = vld [vmem:[#allocation3 + $0xa0] ss:$16 sps:$4 sm:$0xff]  }
 0x207   :  { %v357_v49 = vpop.f32.mrb[3].mxu0  ;;  %v398_v50 = vpop.f32.mrb[3].mxu1  ;;  %v447_v55 = vmul.f32 0.5, %v445_v23  ;;  %v413_v57 = vmul.f32 0.5, %v411_v56  ;;  %v1690_v23 = vld [vmem:[#allocation3 + $0xac] ss:$16 sps:$4 sm:$0xff]   ;;  %613 = vmatpush1.bf16.msra.mxu1 %v1683_v18  ;;  %573 = vmatprep.subr.bf16.mxu0 %v1687_v21 }
 0x208   :  { %1348 = vtanh.f32 %v1668_v43  ;;  %v414_v60 = vmul.f32 0.5, %v412_v51  ;;  %v1698_v41 = vld [vmem:[#allocation3 + $0xa8] ss:$16 sps:$4 sm:$0xff]   ;;  %v1700_v46 = vld [vmem:[#allocation3 + $0xc4] ss:$16 sps:$4 sm:$0xff]   ;;  %614 = vmatprep.subr.bf16.mxu1 %v1690_v23  ;;  %574 = vmatpush1.bf16.msra.mxu0 %v1694_v40 }
 0x209   :  { %1350 = vtanh.f32 %v412_v51  ;;  %v1703_v47 = vld [vmem:[#allocation3 + $0xcc] ss:$16 sps:$4 sm:$0xff]   ;;  %v1706_v51 = vld [vmem:[#allocation3 + $0xc0] ss:$16 sps:$4 sm:$0xff]   ;;  %575 = vmatprep.subr.bf16.mxu0 %v1700_v46 }
 0x20a   :  { %1352 = vtanh.f32 %v447_v55  ;;  %v458_v55 = vpop.permute.xlu1 %457 }
 0x20b   :  { %1354 = vtanh.f32 %v413_v57  ;;  %615 = vmatpush1.bf16.msra.mxu1 %v1698_v41 }
 0x20c   :  { %1356 = vtanh.f32 %v414_v60  ;;  %616 = vmatprep.subr.bf16.mxu1 %v1703_v47  ;;  %576 = vmatpush1.bf16.msra.mxu0 %v1706_v51  ;;  %v1330_v60 = vld [vmem:[#allocation3 + $0xe4] ss:$16 sps:$4 sm:$0xff]  }
 0x20d   :  { %577 = vmatprep.subr.bf16.mxu0 %v1330_v60 }
 0x212   :  { %v1349_v52 = vpop.eup %1348 }
 0x213   :  { %462 = vrot.lane.b32.xlu0 %v1349_v52, %s1435_s2  ;;  %v1351_v53 = vpop.eup %1350 }
 0x214   :  { %v1353_v58 = vpop.eup %1352 }
 0x215   :  { %v451_v59 = vmul.f32 0.5, %v1353_v58  ;;  %v1355_v61 = vpop.eup %1354 }
 0x216   :  { %v417_v0 = vmul.f32 0.5, %v1355_v61  ;;  %v1357_v11 = vpop.eup %1356  ;;  %v1719_v61 = vld [vmem:[#allocation3 + $0xe8] ss:$16 sps:$4 sm:$0xff]  }
 0x217   :  { %423 = vrot.lane.b32.xlu0 %v1351_v53, %s1435_s2  ;;  %v453_v62 = vadd.f32 0.5, %v451_v59  ;;  %v418_v22 = vmul.f32 0.5, %v1357_v11  ;;  %v1710_v53 = vld [vmem:[#allocation3 + $0xc8] ss:$16 sps:$4 sm:$0xff]   ;;  %v1328_v59 = vld [vmem:[#allocation3 + $0xe0] ss:$16 sps:$4 sm:$0xff]  }
 0x218   :  { %v419_v4 = vadd.f32 0.5, %v417_v0  ;;  %617 = vmatpush1.bf16.msra.mxu1 %v1710_v53  ;;  %578 = vmatpush1.bf16.msra.mxu0 %v1328_v59  ;;  %v1438_v0 = vmov 5  }
 0x219   :  { %v420_v49 = vadd.f32 0.5, %v418_v22  ;;  %v460_v56 = vmul.f32 %v458_v55, %v453_v62  ;;  %727 = vmatprep.subr.bf16.mxu0 %v1570_v24  ;;  %1276 = vset.pattern.permute.xlu1 %v1438_v0 }
 0x285   :  { %v463_v63 = vpop.permute.xlu0 %462 }
 0x286   :  { %v465_v3 = vmul.f32 %v463_v63, %v453_v62  ;;  %v1721_v63 = vld [vmem:[#allocation3 + $0xec] ss:$16 sps:$4 sm:$0xff]  }
 0x287   :  { %618 = vmatprep.subr.bf16.mxu1 %v1721_v63 }
 0x288   :  { %467 = vrot.lane.b32.xlu1 %v465_v3, %s1435_s2  ;;  %619 = vmatpush1.bf16.msra.mxu1 %v1719_v61  ;;  %v448_v3 = vmul.f32 0.5, %v1668_v43 }
 0x289   :  { %v424_v9 = vpop.permute.xlu0 %423  ;;  %768 = vmatprep.subr.bf16.mxu1 %v1572_v25 }
 0x28a   :  { %v426_v10 = vmul.f32 %v424_v9, %v419_v4 }
 0x28c   :  { %1358 = vtanh.f32 %v426_v10 }
 0x296   :  { %v1359_v50 = vpop.eup %1358 }
 0x297   :  { %v428_v52 = vmul.f32 %v1359_v50, %v420_v49 }
 0x299   :  { %478 = vrot.lane.b32.xlu1 %v428_v52, %s1435_s2 }
 0x29d   :  { %684 = vperm.xlu1 %1276, %v1534_v2  }
 0x2fa   :  { %v468_v57 = vpop.permute.xlu1 %467 }
 0x2fb   :  { %v1716_v58 = vadd.f32 %v468_v57, %v460_v56 }
 0x2fd   :  { %1360 = vtanh.f32 %v1716_v58 }
 0x2fe   :  { %1362 = vtanh.f32 %v448_v3 }
 0x307   :  { %v1361_v62 = vpop.eup %1360 }
 0x308   :  { %473 = vrot.lane.b32.xlu0 %v1361_v62, %s1435_s2  ;;  %v1363_v4 = vpop.eup %1362 }
 0x309   :  { %v452_v5 = vmul.f32 0.5, %v1363_v4 }
 0x30b   :  { %v454_v9 = vadd.f32 0.5, %v452_v5  ;;  %v479_v22 = vpop.permute.xlu1 %478 }
 0x30c   :  { %678 = vperm.xlu0 %1275, %v1534_v2  }
 0x310   :  { %657 = vrot.lane.b32.xlu0 %v426_v10, %s1435_s2 }
 0x37a   :  { %v474_v24 = vpop.permute.xlu0 %473 }
 0x37b   :  { %v476_v11 = vmul.f32 %v474_v24, %v454_v9 }
 0x37d   :  { %v481_v49 = vsel %vm314_vm0, %v476_v11, %v479_v22 }
 0x37e   :  { %v482_v50 = vpack.c.bf16 %v481_v49, %v481_v49 }
 0x380   :  { %596 = vmatmul.mubr.bf16.vlgmr.msra.gmra.mrb[4].mxu0 %v482_v50  ;;  %637 = vmatmul.mubr.bf16.vlgmr.msra.gmra.mrb[4].mxu1 %v482_v50 }
 0x381   :  { %728 = vmatpush1.bf16.msra.mxu0 %v1574_v26  ;;  %769 = vmatpush1.bf16.msra.mxu1 %v1576_v27  ;;  %v685_v26 = vpop.permute.xlu1 %684 }
 0x382   :  { %729 = vmatprep.subr.bf16.mxu0 %v1580_v28  ;;  %770 = vmatprep.subr.bf16.mxu1 %v1582_v29 }
 0x383   :  { %759 = vmatprep.mubr.bf16.mxu0 %v1432_v1  ;;  %800 = vmatprep.mubr.bf16.mxu1 %v1432_v1 }
 0x385   :  { %730 = vmatpush1.bf16.msra.mxu0 %v1586_v30  ;;  %771 = vmatpush1.bf16.msra.mxu1 %v1588_v31 }
 0x386   :  { %731 = vmatprep.subr.bf16.mxu0 %v1592_v32  ;;  %772 = vmatprep.subr.bf16.mxu1 %v1594_v33  ;;  %v687_v32 = vmul.f32 %v685_v26, %v1626_v44 }
 0x389   :  { %732 = vmatpush1.bf16.msra.mxu0 %v1598_v34  ;;  %773 = vmatpush1.bf16.msra.mxu1 %v1600_v35 }
 0x38a   :  { %733 = vmatprep.subr.bf16.mxu0 %v1604_v36  ;;  %774 = vmatprep.subr.bf16.mxu1 %v1606_v37 }
 0x38b   :  { %v679_v28 = vpop.permute.xlu0 %678 }
 0x38c   :  { %v681_v30 = vmul.f32 %v679_v28, %v1629_v45  ;;  %v682_v36 = vmul.f32 %v679_v28, %v1556_v15 }
 0x38d   :  { %734 = vmatpush1.bf16.msra.mxu0 %v1610_v38  ;;  %775 = vmatpush1.bf16.msra.mxu1 %v1612_v39  ;;  %v688_v38 = vmul.f32 %v685_v26, %v1559_v16 }
 0x38e   :  { %735 = vmatprep.subr.bf16.mxu0 %v1681_v17  ;;  %776 = vmatprep.subr.bf16.mxu1 %v1685_v19  ;;  %v689_v34 = vadd.f32 %v687_v32, %v681_v30 }
 0x38f   :  { %v690_v17 = vadd.f32 %v688_v38, %v682_v36  ;;  %v658_v32 = vpop.permute.xlu0 %657 }
 0x390   :  { %v691_v43 = vadd.f32 %v689_v34, %v1634_v48 }
 0x391   :  { %736 = vmatpush1.bf16.msra.mxu0 %v1679_v13  ;;  %777 = vmatpush1.bf16.msra.mxu1 %v1683_v18  ;;  %v692_v56 = vadd.f32 %v690_v17, %v1566_v20 }
 0x392   :  { %737 = vmatprep.subr.bf16.mxu0 %v1687_v21  ;;  %778 = vmatprep.subr.bf16.mxu1 %v1690_v23 }
 0x395   :  { %738 = vmatpush1.bf16.msra.mxu0 %v1694_v40  ;;  %779 = vmatpush1.bf16.msra.mxu1 %v1698_v41 }
 0x396   :  { %739 = vmatprep.subr.bf16.mxu0 %v1700_v46  ;;  %780 = vmatprep.subr.bf16.mxu1 %v1703_v47 }
 0x399   :  { %740 = vmatpush1.bf16.msra.mxu0 %v1706_v51  ;;  %781 = vmatpush1.bf16.msra.mxu1 %v1710_v53 }
 0x39a   :  { %782 = vmatprep.subr.bf16.mxu1 %v1721_v63  ;;  %741 = vmatprep.subr.bf16.mxu0 %v1330_v60 }
 0x39d   :  { %742 = vmatpush1.bf16.msra.mxu0 %v1328_v59  ;;  %783 = vmatpush1.bf16.msra.mxu1 %v1719_v61 }
 0x39e   :  { %887 = vmatprep.subr.bf16.mxu0 %v1572_v25 }
 0x453   :  { %v597_v10 = vpop.f32.mrb[4].mxu0  ;;  %v638_v13 = vpop.f32.mrb[4].mxu1 }
 0x454   :  { %v693_v21 = vadd.f32 %v691_v43, %v597_v10  ;;  %v599_v40 = vpop.f32.mrb[5].mxu0  ;;  %v640_v46 = vpop.f32.mrb[5].mxu1  ;;  %v645_v0 = vadd.f32 %v638_v13, %v1675_v54 }
 0x455   :  { %v601_v25 = vpop.f32.mrb[6].mxu0  ;;  %v642_v51 = vpop.f32.mrb[6].mxu1  ;;  %v646_v57 = vadd.f32 %v640_v46, %v1666_v42  ;;  %v694_v59 = vadd.f32 %v692_v56, %v599_v40 }
 0x456   :  { %v602_v52 = vpop.f32.mrb[7].mxu0  ;;  %v643_v55 = vpop.f32.mrb[7].mxu1  ;;  %v647_v3 = vmul.f32 0.5, %v645_v0  ;;  %v695_v4 = vmul.f32 0.5, %v693_v21  ;;  %v1439_v25 = vmov 7   ;;  %v1440_v51 = vmov 6  }
 0x457   :  { %1364 = vtanh.f32 %v646_v57  ;;  %v648_v40 = vmul.f32 0.5, %v646_v57  ;;  %1278 = vset.pattern.permute.xlu0 %v1439_v25  ;;  %1277 = vset.pattern.permute.xlu1 %v1440_v51 }
 0x458   :  { %1366 = vtanh.f32 %v694_v59 }
 0x459   :  { %1368 = vtanh.f32 %v647_v3 }
 0x45a   :  { %1370 = vtanh.f32 %v695_v4 }
 0x461   :  { %v1365_v60 = vpop.eup %1364 }
 0x462   :  { %662 = vrot.lane.b32.xlu1 %v1365_v60, %s1435_s2  ;;  %v1367_v62 = vpop.eup %1366  ;;  %v696_v60 = vmul.f32 0.5, %v694_v59 }
 0x463   :  { %v1369_v5 = vpop.eup %1368 }
 0x464   :  { %v651_v9 = vmul.f32 0.5, %v1369_v5  ;;  %v1371_v24 = vpop.eup %1370 }
 0x465   :  { %v699_v22 = vmul.f32 0.5, %v1371_v24 }
 0x466   :  { %706 = vrot.lane.b32.xlu1 %v1367_v62, %s1435_s2  ;;  %v653_v11 = vadd.f32 0.5, %v651_v9 }
 0x467   :  { %v701_v26 = vadd.f32 0.5, %v699_v22 }
 0x468   :  { %v660_v34 = vmul.f32 %v658_v32, %v653_v11 }
 0x469   :  { %v704_v43 = vmul.f32 %v701_v26, %v1716_v58 }
 0x4d4   :  { %v663_v49 = vpop.permute.xlu1 %662 }
 0x4d5   :  { %v665_v50 = vmul.f32 %v663_v49, %v653_v11 }
 0x4d7   :  { %667 = vrot.lane.b32.xlu0 %v665_v50, %s1435_s2 }
 0x4d8   :  { %v707_v28 = vpop.permute.xlu1 %706 }
 0x4d9   :  { %v709_v30 = vmul.f32 %v707_v28, %v701_v26 }
 0x4db   :  { %711 = vrot.lane.b32.xlu1 %v709_v30, %s1435_s2 }
 0x549   :  { %v668_v36 = vpop.permute.xlu0 %667 }
 0x54a   :  { %v1776_v38 = vadd.f32 %v668_v36, %v660_v34 }
 0x54c   :  { %1372 = vtanh.f32 %v1776_v38 }
 0x54d   :  { %v712_v10 = vpop.permute.xlu1 %711 }
 0x54e   :  { %v1780_v13 = vadd.f32 %v712_v10, %v704_v43 }
 0x550   :  { %1374 = vtanh.f32 %v1780_v13 }
 0x551   :  { %1376 = vtanh.f32 %v648_v40 }
 0x552   :  { %1378 = vtanh.f32 %v696_v60 }
 0x556   :  { %v1373_v17 = vpop.eup %1372 }
 0x557   :  { %673 = vrot.lane.b32.xlu0 %v1373_v17, %s1435_s2 }
 0x55a   :  { %v1375_v21 = vpop.eup %1374 }
 0x55b   :  { %717 = vrot.lane.b32.xlu1 %v1375_v21, %s1435_s2  ;;  %v1377_v46 = vpop.eup %1376 }
 0x55c   :  { %v652_v52 = vmul.f32 0.5, %v1377_v46  ;;  %v1379_v62 = vpop.eup %1378 }
 0x55d   :  { %v700_v57 = vmul.f32 0.5, %v1379_v62 }
 0x55e   :  { %v654_v58 = vadd.f32 0.5, %v652_v52 }
 0x55f   :  { %838 = vperm.xlu1 %1277, %v1534_v2   ;;  %v702_v3 = vadd.f32 0.5, %v700_v57 }
 0x5c9   :  { %v674_v55 = vpop.permute.xlu0 %673 }
 0x5ca   :  { %v676_v56 = vmul.f32 %v674_v55, %v654_v58 }
 0x5cc   :  { %722 = vrot.lane.b32.xlu0 %v676_v56, %s1435_s2 }
 0x5cd   :  { %v718_v0 = vpop.permute.xlu1 %717 }
 0x5ce   :  { %v720_v4 = vmul.f32 %v718_v0, %v702_v3 }
 0x5d0   :  { %844 = vperm.xlu0 %1278, %v1534_v2  }
 0x63e   :  { %v723_v5 = vpop.permute.xlu0 %722 }
 0x63f   :  { %v725_v9 = vsel %vm314_vm0, %v720_v4, %v723_v5 }
 0x640   :  { %v726_v24 = vpack.c.bf16 %v725_v9, %v725_v9 }
 0x642   :  { %760 = vmatmul.mubr.bf16.vlgmr.msra.gmra.mrb[8].mxu0 %v726_v24  ;;  %801 = vmatmul.mubr.bf16.vlgmr.msra.gmra.mrb[8].mxu1 %v726_v24 }
 0x643   :  { %888 = vmatpush1.bf16.msra.mxu0 %v1576_v27  ;;  %919 = vmatprep.mubr.bf16.mxu0 %v1432_v1  ;;  %v839_v27 = vpop.permute.xlu1 %838 }
 0x644   :  { %889 = vmatprep.subr.bf16.mxu0 %v1582_v29  ;;  %v841_v11 = vmul.f32 %v839_v27, %v1629_v45 }
 0x647   :  { %890 = vmatpush1.bf16.msra.mxu0 %v1588_v31  ;;  %v842_v31 = vmul.f32 %v839_v27, %v1556_v15 }
 0x648   :  { %891 = vmatprep.subr.bf16.mxu0 %v1594_v33 }
 0x64b   :  { %892 = vmatpush1.bf16.msra.mxu0 %v1600_v35 }
 0x64c   :  { %893 = vmatprep.subr.bf16.mxu0 %v1606_v37 }
 0x64f   :  { %894 = vmatpush1.bf16.msra.mxu0 %v1612_v39  ;;  %v845_v2 = vpop.permute.xlu0 %844 }
 0x650   :  { %895 = vmatprep.subr.bf16.mxu0 %v1685_v19  ;;  %v848_v29 = vmul.f32 %v845_v2, %v1559_v16  ;;  %v847_v16 = vmul.f32 %v845_v2, %v1626_v44 }
 0x652   :  { %v850_v37 = vadd.f32 %v848_v29, %v842_v31  ;;  %v849_v22 = vadd.f32 %v847_v16, %v841_v11 }
 0x653   :  { %896 = vmatpush1.bf16.msra.mxu0 %v1683_v18 }
 0x654   :  { %897 = vmatprep.subr.bf16.mxu0 %v1690_v23  ;;  %v851_v49 = vadd.f32 %v849_v22, %v1634_v48  ;;  %v1337_v22 = vld [vmem:[%s1892_s5 + $0x18] sm:$0xff]  }
 0x657   :  { %898 = vmatpush1.bf16.msra.mxu0 %v1698_v41 }
 0x658   :  { %899 = vmatprep.subr.bf16.mxu0 %v1703_v47 }
 0x65b   :  { %900 = vmatpush1.bf16.msra.mxu0 %v1710_v53  ;;  %v852_v53 = vadd.f32 %v850_v37, %v1566_v20 }
 0x65c   :  { %901 = vmatprep.subr.bf16.mxu0 %v1721_v63 }
 0x65f   :  { %902 = vmatpush1.bf16.msra.mxu0 %v1719_v61 }
 0x715   :  { %v761_v33 = vpop.f32.mrb[8].mxu0  ;;  %v802_v35 = vpop.f32.mrb[8].mxu1 }
 0x716   :  { %v763_v39 = vpop.f32.mrb[9].mxu0  ;;  %v804_v18 = vpop.f32.mrb[9].mxu1  ;;  %v809_v20 = vadd.f32 %v802_v35, %v1675_v54  ;;  %v853_v50 = vadd.f32 %v851_v49, %v761_v33 }
 0x717   :  { %v765_v19 = vpop.f32.mrb[10].mxu0  ;;  %v806_v23 = vpop.f32.mrb[10].mxu1  ;;  %v810_v63 = vadd.f32 %v804_v18, %v1666_v42  ;;  %v854_v61 = vadd.f32 %v852_v53, %v763_v39 }
 0x718   :  { %v766_v41 = vpop.f32.mrb[11].mxu0  ;;  %v807_v47 = vpop.f32.mrb[11].mxu1  ;;  %v811_v26 = vmul.f32 0.5, %v809_v20  ;;  %v855_v28 = vmul.f32 0.5, %v853_v50  ;;  %v1443_v20 = vmov 9   ;;  %v1444_v50 = vmov 8  }
 0x719   :  { %1380 = vtanh.f32 %v810_v63  ;;  %v812_v56 = vmul.f32 0.5, %v810_v63  ;;  %v856_v3 = vmul.f32 0.5, %v854_v61  ;;  %1280 = vset.pattern.permute.xlu1 %v1443_v20  ;;  %1279 = vset.pattern.permute.xlu0 %v1444_v50 }
 0x71a   :  { %1382 = vtanh.f32 %v854_v61 }
 0x71b   :  { %1384 = vtanh.f32 %v811_v26  ;;  %v1404_v26 = vld [vmem:[%s1887_s0] sm:$0xff] }
 0x71c   :  { %1386 = vtanh.f32 %v855_v28  ;;  %v1445_v28 = vmov 11  }
 0x723   :  { %v1381_v59 = vpop.eup %1380 }
 0x724   :  { %822 = vrot.lane.b32.xlu1 %v1381_v59, %s1435_s2  ;;  %v1383_v15 = vpop.eup %1382  ;;  %v1441_v59 = vmov 0.0  }
 0x725   :  { %v1385_v30 = vpop.eup %1384  ;;  %1226 = vmatprep.subr.bf16.mxu1 %v1441_v59  ;;  %1234 = vmatprep.mubr.msk.bf16.mxu1 %vm1442_vm1, %v1441_v59 }
 0x726   :  { %v815_v32 = vmul.f32 0.5, %v1385_v30  ;;  %v1387_v34 = vpop.eup %1386 }
 0x727   :  { %v859_v43 = vmul.f32 0.5, %v1387_v34  ;;  %v1447_v34 = vmov 12  }
 0x728   :  { %866 = vrot.lane.b32.xlu1 %v1383_v15, %s1435_s2  ;;  %v817_v36 = vadd.f32 0.5, %v815_v32  ;;  %v1336_v15 = vld [vmem:[%s1892_s5 + $0x10] sm:$0xff]   ;;  %v1446_v32 = vmov 10  }
 0x729   :  { %v861_v44 = vadd.f32 0.5, %v859_v43 }
 0x72a   :  { %v820_v48 = vmul.f32 %v817_v36, %v1776_v38 }
 0x72b   :  { %v864_v25 = vmul.f32 %v861_v44, %v1780_v13 }
 0x796   :  { %v823_v10 = vpop.permute.xlu1 %822 }
 0x797   :  { %v825_v17 = vmul.f32 %v823_v10, %v817_v36 }
 0x799   :  { %827 = vrot.lane.b32.xlu0 %v825_v17, %s1435_s2 }
 0x79a   :  { %v867_v45 = vpop.permute.xlu1 %866 }
 0x79b   :  { %v869_v21 = vmul.f32 %v867_v45, %v861_v44 }
 0x79d   :  { %871 = vrot.lane.b32.xlu1 %v869_v21, %s1435_s2 }
 0x80b   :  { %v828_v40 = vpop.permute.xlu0 %827 }
 0x80c   :  { %v830_v46 = vadd.f32 %v828_v40, %v820_v48  ;;  %v1338_v48 = vld [vmem:[%s1895_s8] sm:$0xff]  }
 0x80e   :  { %1388 = vtanh.f32 %v830_v46 }
 0x80f   :  { %v872_v51 = vpop.permute.xlu1 %871 }
 0x810   :  { %v874_v52 = vadd.f32 %v872_v51, %v864_v25 }
 0x812   :  { %1390 = vtanh.f32 %v874_v52 }
 0x813   :  { %1392 = vtanh.f32 %v812_v56  ;;  %v1170_v56 = vld [vmem:[%s1894_s7] ss:$0 sm:$0xff] }
 0x814   :  { %1394 = vtanh.f32 %v856_v3 }
 0x818   :  { %v1389_v58 = vpop.eup %1388 }
 0x819   :  { %833 = vrot.lane.b32.xlu0 %v1389_v58, %s1435_s2 }
 0x81c   :  { %v1391_v55 = vpop.eup %1390 }
 0x81d   :  { %877 = vrot.lane.b32.xlu1 %v1391_v55, %s1435_s2  ;;  %v1393_v60 = vpop.eup %1392 }
 0x81e   :  { %v816_v62 = vmul.f32 0.5, %v1393_v60  ;;  %v1395_v13 = vpop.eup %1394 }
 0x81f   :  { %v860_v4 = vmul.f32 0.5, %v1395_v13  ;;  %v149_v13 = vsub.s32 4, %v1538_v6  ;;  %v1214_v6 = vld [vmem:[#allocation2] ss:$0 sm:$0xff] }
 0x820   :  { %v818_v57 = vadd.f32 0.5, %v816_v62 }
 0x821   :  { %v862_v9 = vadd.f32 0.5, %v860_v4 }
 0x88b   :  { %v834_v38 = vpop.permute.xlu0 %833 }
 0x88c   :  { %v836_v0 = vmul.f32 %v834_v38, %v818_v57 }
 0x88e   :  { %882 = vrot.lane.b32.xlu0 %v836_v0, %s1435_s2 }
 0x88f   :  { %v878_v5 = vpop.permute.xlu1 %877 }
 0x890   :  { %v880_v24 = vmul.f32 %v878_v5, %v862_v9 }
 0x900   :  { %v883_v2 = vpop.permute.xlu0 %882 }
 0x901   :  { %v885_v27 = vsel %vm314_vm0, %v880_v24, %v883_v2 }
 0x902   :  { %v886_v29 = vpack.c.bf16 %v885_v27, %v885_v27 }
 0x904   :  { %920 = vmatmul.mubr.bf16.vlgmr.msra.gmra.mrb[12].mxu0 %v886_v29 }
 0x9d7   :  { %v921_v31 = vpop.f32.mrb[12].mxu0 }
 0x9d8   :  { %v923_v33 = vpop.f32.mrb[13].mxu0  ;;  %v922_v19 = vadd.f32 %v921_v31, %v1675_v54  ;;  %v1335_v54 = vld [vmem:[%s1892_s5 + $0x8] sm:$0xff]  }
 0x9d9   :  { %v924_v35 = vadd.f32 %v923_v33, %v1666_v42  ;;  %v925_v37 = vpop.f32.mrb[14].mxu0  ;;  %v1334_v42 = vld [vmem:[%s1892_s5] sm:$0xff]  }
 0x9da   :  { %v926_v39 = vpop.f32.mrb[15].mxu0  ;;  %v928_v23 = vmul.f32 0.5, %v922_v19  ;;  %1227 = vmatpush3.bf16.msra.mxu1 %v1334_v42 }
 0x9db   :  { %1396 = vtanh.f32 %v924_v35  ;;  %1228 = vmatprep.subr.bf16.mxu1 %v1441_v59  ;;  %v929_v36 = vmul.f32 0.5, %v924_v35 }
 0x9dc   :  { %1398 = vtanh.f32 %v928_v23 }
 0x9de   :  { %1229 = vmatpush3.bf16.msra.mxu1 %v1335_v54 }
 0x9df   :  { %1230 = vmatprep.subr.bf16.mxu1 %v1441_v59 }
 0x9e2   :  { %1231 = vmatpush3.bf16.msra.mxu1 %v1336_v15 }
 0x9e3   :  { %1232 = vmatprep.subr.bf16.mxu1 %v1441_v59 }
 0x9e5   :  { %v1397_v18 = vpop.eup %1396 }
 0x9e6   :  { %939 = vrot.lane.b32.xlu1 %v1397_v18, %s1435_s2  ;;  %v1399_v41 = vpop.eup %1398  ;;  %1233 = vmatpush3.bf16.msra.mxu1 %v1337_v22 }
 0x9e7   :  { %v932_v47 = vmul.f32 0.5, %v1399_v41  ;;  %1238 = vmatprep.subr.bf16.mxu1 %v1441_v59 }
 0x9e9   :  { %v934_v53 = vadd.f32 0.5, %v932_v47 }
 0x9eb   :  { %v937_v16 = vmul.f32 %v934_v53, %v830_v46  ;;  %v94_v46 = vld [vmem:[%s1893_s6] sm:$0x1f] }
 0x9ec   :  { %v104_v25 = vrot.slane %v94_v46, %v1550_v12  ;;  %v120_v55 = vrot.slane %v94_v46, %v1553_v14  ;;  %v130_v57 = vrot.slane %v94_v46, %v129_v7  ;;  %v140_v12 = vrot.slane %v94_v46, %v139_v8  ;;  %v1210_v8 = vld [vmem:[%s1896_s9] ss:$0 sm:$0xff] }
 0x9ed   :  { %v150_v9 = vrot.slane %v94_v46, %v149_v13 }
 0xa58   :  { %v940_v63 = vpop.permute.xlu1 %939 }
 0xa59   :  { %v942_v61 = vmul.f32 %v940_v63, %v934_v53 }
 0xa5b   :  { %944 = vrot.lane.b32.xlu0 %v942_v61, %s1435_s2 }
 0xa5f   :  { %98 = vperm.xlu0 %1279, %v1404_v26  }
 0xa63   :  { %1282 = vset.pattern.permute.xlu0 %v1445_v28 }
 0xa64   :  { %134 = vperm.xlu0 %1282, %v1404_v26  }
 0xa68   :  { %1285 = vset.pattern.permute.xlu0 %v1432_v1 }
 0xacd   :  { %v945_v11 = vpop.permute.xlu0 %944 }
 0xace   :  { %v947_v49 = vadd.f32 %v945_v11, %v937_v16 }
 0xad0   :  { %1400 = vtanh.f32 %v947_v49 }
 0xad1   :  { %1402 = vtanh.f32 %v929_v36 }
 0xada   :  { %v1401_v30 = vpop.eup %1400 }
 0xadb   :  { %950 = vrot.lane.b32.xlu1 %v1401_v30, %s1435_s2  ;;  %v1403_v43 = vpop.eup %1402 }
 0xadc   :  { %v933_v10 = vmul.f32 0.5, %v1403_v43 }
 0xade   :  { %v935_v17 = vadd.f32 0.5, %v933_v10  ;;  %v99_v51 = vpop.permute.xlu0 %98 }
 0xadf   :  { %114 = vperm.xlu1 %1280, %v1404_v26   ;;  %v105_v58 = vmul.f32 %v104_v25, %v99_v51 }
 0xae1   :  { %v112_v60 = vadd.f32 %v1170_v56, %v105_v58 }
 0xae3   :  { %1281 = vset.pattern.permute.xlu1 %v1446_v32  ;;  %v135_v4 = vpop.permute.xlu0 %134 }
 0xae4   :  { %124 = vperm.xlu1 %1281, %v1404_v26   ;;  %v141_v14 = vmul.f32 %v140_v12, %v135_v4 }
 0xae8   :  { %1283 = vset.pattern.permute.xlu1 %v1447_v34 }
 0xae9   :  { %144 = vperm.xlu1 %1283, %v1404_v26  }
 0xaed   :  { %1284 = vset.pattern.permute.xlu1 %v1432_v1  ;;  %v1339_v1 = vld [vmem:[%s1895_s8 + $0x8] sm:$0x7f]  }
 0xaee   :  { %v1061_v40 = vsel %vm1059_vm2, %v1339_v1, 0  ;;  %1113 = vperm.xlu1 %1284, %v1214_v6  }
 0xb4d   :  { %v951_v44 = vpop.permute.xlu1 %950 }
 0xb4e   :  { %v953_v45 = vmul.f32 %v951_v44, %v935_v17 }
 0xb50   :  { %v954_v21 = vpack.c.bf16 %v953_v45, %v953_v45 }
 0xb52   :  { %1235 = vmatmul.mubr.msk.bf16.vlgmr.msra.gmra.mrb[12].mxu1 %vm314_vm0, %v954_v21 }
 0xb53   :  { %1242 = vmatprep.mubr.msk.bf16.mxu1 %vm1442_vm1, %v1441_v59  ;;  %1239 = vmatpush3.bf16.msra.mxu1 %v1338_v48 }
 0xb54   :  { %1240 = vmatprep.subr.bf16.mxu1 %v1441_v59 }
 0xb57   :  { %1241 = vmatpush3.bf16.msra.mxu1 %v1061_v40 }
 0xb58   :  { %1246 = vmatprep.subr.bf16.mxu1 %v1441_v59 }
 0xb5e   :  { %v115_v52 = vpop.permute.xlu1 %114 }
 0xb5f   :  { %v121_v62 = vmul.f32 %v120_v55, %v115_v52 }
 0xb61   :  { %v122_v0 = vadd.f32 %v121_v62, %v112_v60 }
 0xb63   :  { %v125_v38 = vpop.permute.xlu1 %124 }
 0xb64   :  { %v131_v3 = vmul.f32 %v130_v57, %v125_v38 }
 0xb66   :  { %v132_v5 = vadd.f32 %v131_v3, %v122_v0 }
 0xb68   :  { %v145_v24 = vpop.permute.xlu1 %144  ;;  %v142_v2 = vadd.f32 %v141_v14, %v132_v5 }
 0xb69   :  { %v151_v27 = vmul.f32 %v150_v9, %v145_v24 }
 0xb6b   :  { %v152_v29 = vadd.f32 %v151_v27, %v142_v2 }
 0xb6d   :  { %v1114_v54 = vpop.permute.xlu1 %1113 }
 0xc25   :  { %v1024_v31 = vpop.f32.mrb[12].mxu1 }
 0xc26   :  { %v1030_v33 = vadd.f32 %v1024_v31, %v152_v29  ;;  %v1236_v35 = vpop.f32.mrb[13].mxu1 }
 0xc27   :  { %v1027_v7 = vpop.f32.mrb[14].mxu1 }
 0xc28   :  { %v1031_v37 = vmax.f32 %v1030_v33, 0.0  ;;  %v1237_v39 = vpop.f32.mrb[15].mxu1 }
 0xc2a   :  { %v1032_v18 = vpack.c.bf16 %v1031_v37, %v1031_v37 }
 0xc2c   :  { %1243 = vmatmul.mubr.msk.bf16.vlgmr.msra.gmra.mrb[16].mxu1 %vm1055_vm3, %v1032_v18 }
 0xc2d   :  { %1248 = vmatprep.mubr.msk.bf16.mxu1 %vm1442_vm1, %v1441_v59  ;;  %v1104_v59 = vld [vmem:[%s1897_s10] sm:$0xf] }
 0xcff   :  { %v1097_v19 = vpop.f32.mrb[16].mxu1 }
 0xd00   :  { %v1098_v23 = vadd.f32 %v1210_v8, %v1097_v19  ;;  %v1244_v41 = vpop.f32.mrb[17].mxu1 }
 0xd01   :  { %v1100_v47 = vpop.f32.mrb[18].mxu1 }
 0xd02   :  { %v1103_v53 = vmax.f32 %v1098_v23, 0.0  ;;  %v1245_v63 = vpop.f32.mrb[19].mxu1 }
 0xd04   :  { %v1105_v61 = vpack.c.bf16 %v1103_v53, %v1103_v53 }
 0xd06   :  { %v1121_v42 = vsel %vm1116_vm4, %v1105_v61, 0 }
 0xd07   :  { %1247 = vmatpush3.bf16.xpose.msra.mxu1 %v1121_v42 }
 0xd0e   :  { %1249 = vmatmul.mubr.msk.bf16.vlgmr.msra.gmra.mrb[20].mxu1 %vm1116_vm4, %v1104_v59 }
 0xde1   :  { %v1157_v15 = vpop.f32.mrb[20].mxu1 }
 0xde2   :  { %v1250_v16 = vpop.f32.mrb[21].mxu1  ;;  %v1158_v11 = vadd.f32 %v1157_v15, %v1114_v54 }
 0xde3   :  { %v1160_v22 = vpop.f32.mrb[22].mxu1 }
 0xde4   :  { %1164 = vst.msk [vmem:[%s1899_s12] sm:$0xff] %vm1163_vm5, %v1158_v11  ;;  %v1251_v49 = vpop.f32.mrb[23].mxu1 }
 0xde5   :  { %1169 = vsyncpa [#allocation4], 1 }

</bundles_post_ra>
